<compile_context>
chip_gen: v5e
topology: v5e:2x2
jax: 0.10.0
libtpu: 0.0.40
codegen_flags: <defaults>
</compile_context>

<pallas_src>
import functools

import jax
import jax.numpy as jnp
from jax.experimental import pallas as pl
from jax.experimental.pallas import tpu as pltpu


CP = 8  # channel padding -> each padded image row is one aligned 8-sublane group


def _swimnet_kernel(img_ref, wc_ref, bc_ref, w1_ref, b1_ref, w2_ref, b2_ref,
                    out_ref, acc_ref, *, h_out, w_out):
    """One grid step == one batch element.

    img_ref : ((H+2)*CP, W+2)  f32  padded image, row index = h_pad*CP + c
    wc_ref  : (F, 3*3*CP)      bf16 conv weight, col = dj*3*CP + di*CP + c
    bc_ref  : (F, 1)           f32  conv bias (broadcast over lanes)
    w1_ref  : (F, HID)         bf16 head linear-1 weight
    b1_ref  : (1, HID)         f32  head linear-1 bias
    w2_ref  : (HID, 128)       bf16 head linear-2 weight (lane padded)
    b2_ref  : (1, 128)         f32  head linear-2 bias (pad cols = -30 -> sig~0)
    out_ref : (1, 128)         f32  sigmoid output block for this batch element
    acc_ref : (F, w_out)       f32  running sum of relu(conv) over output rows
    """
    acc_ref[...] = jnp.zeros_like(acc_ref)

    @pl.loop(0, h_out)
    def _row(r):
        # 3 padded input rows x CP channel-sublanes for this output row: an
        # aligned, contiguous 24-sublane block (no im2col materialisation).
        row0 = pl.multiple_of(r * CP, CP)
        blk = img_ref[pl.ds(row0, 3 * CP), :]                     # (3*CP, W+2) f32
        # Patch rows built in vregs: three width-shifted slices stacked to K=72.
        stacked = jnp.concatenate(
            [blk[:, 0:w_out], blk[:, 1:w_out + 1], blk[:, 2:w_out + 2]],
            axis=0).astype(jnp.bfloat16)                          # (3*3*CP, w_out)
        # Conv for this output row: single K=72 bf16 MXU matmul, f32 accumulate.
        y = jnp.dot(wc_ref[...], stacked,
                    preferred_element_type=jnp.float32)           # (F, w_out)
        # Bias + ReLU + GAP partial sum (stays a single fused elementwise pass).
        acc_ref[...] += jnp.maximum(y + bc_ref[...], 0.0)

    # Global average pool: contract the lane (width) axis on the MXU with a
    # 1/(H*W)-scaled ones row, landing features lane-major (1, F) so the head
    # matmuls need no transpose.
    inv_hw = 1.0 / float(h_out * w_out)
    ones_row = jnp.full((1, w_out), inv_hw, dtype=jnp.float32)
    feats = jax.lax.dot_general(ones_row, acc_ref[...],
                                (((1,), (1,)), ((), ())),
                                preferred_element_type=jnp.float32)  # (1, F)

    # Head: Linear -> ReLU -> Linear -> Sigmoid (matches nn.Sequential).
    h = jnp.dot(feats.astype(jnp.bfloat16), w1_ref[...],
                preferred_element_type=jnp.float32) + b1_ref[...]
    h = jnp.maximum(h, 0.0)
    logits = jnp.dot(h.astype(jnp.bfloat16), w2_ref[...],
                     preferred_element_type=jnp.float32) + b2_ref[...]
    out_ref[...] = jax.nn.sigmoid(logits)                          # (1, 128) padded


def swimnet_forward(x, wconv, bconv, w1, b1, w2, b2):
    """x: (N, C, H, W) float32 NCHW; wconv: (F, C, 3, 3). Returns bbox (N, 4)."""
    n, c, h, w = x.shape
    feat = wconv.shape[0]          # 512 (resnet18-style feature width)
    hid = w1.shape[1]              # 512 head hidden width
    lane = 128
    assert c <= CP, "stem conv expects <= 8 input channels (RGB)"

    # Pad spatially ('same' padding for the 3x3 stem), zero-pad channels to CP
    # sublanes, and lay rows out as (h, c) so a 3x3xC patch window is one
    # contiguous 8-aligned 24-sublane block.  This is raw-image HBM traffic
    # only -- no im2col tensor is ever written to HBM.
    xp = jnp.pad(x, ((0, 0), (0, CP - c), (1, 1), (1, 1)))         # (N, CP, H+2, W+2)
    img = jnp.transpose(xp, (0, 2, 1, 3)).reshape(n, (h + 2) * CP, w + 2)

    # Conv weight -> (F, 3*3*CP) bf16, column = dj*3*CP + di*CP + c (padded c = 0).
    wc = jnp.zeros((feat, 3, 3, CP), wconv.dtype)
    wc = wc.at[:, :, :, :c].set(jnp.transpose(wconv, (0, 3, 2, 1)))  # (F, kw, kh, c)
    wc = wc.reshape(feat, 3 * 3 * CP).astype(jnp.bfloat16)
    bc = bconv.reshape(feat, 1).astype(jnp.float32)

    # Head weights in bf16 (f32 accumulation in-kernel); lane-dense padded
    # 512->4 projection; padded bias columns get -30 so their sigmoid is ~0.
    w1b = w1.astype(jnp.bfloat16)
    b1f = b1.reshape(1, hid).astype(jnp.float32)
    nout = w2.shape[1]
    w2p = jnp.pad(w2, ((0, 0), (0, lane - nout))).astype(jnp.bfloat16)
    b2p = jnp.pad(b2.reshape(1, nout), ((0, 0), (0, lane - nout)),
                  constant_values=-30.0).astype(jnp.float32)

    kernel = functools.partial(_swimnet_kernel, h_out=h, w_out=w)

    out = pl.pallas_call(
        kernel,
        out_shape=jax.ShapeDtypeStruct((n, 1, lane), jnp.float32),
        grid=(n,),
        in_specs=[
            # Whole padded image for this batch element, VMEM-resident.
            pl.BlockSpec((None, (h + 2) * CP, w + 2), lambda b: (b, 0, 0)),
            # Weights / biases: full arrays, constant index -> resident in VMEM.
            pl.BlockSpec((feat, 3 * 3 * CP), lambda b: (0, 0)),
            pl.BlockSpec((feat, 1), lambda b: (0, 0)),
            pl.BlockSpec((feat, hid), lambda b: (0, 0)),
            pl.BlockSpec((1, hid), lambda b: (0, 0)),
            pl.BlockSpec((hid, lane), lambda b: (0, 0)),
            pl.BlockSpec((1, lane), lambda b: (0, 0)),
        ],
        out_specs=pl.BlockSpec((None, 1, lane), lambda b: (b, 0, 0)),
        scratch_shapes=[pltpu.VMEM((feat, w), jnp.float32)],
        compiler_params=pltpu.CompilerParams(
            dimension_semantics=("parallel",),
            vmem_limit_bytes=48 * 1024 * 1024,   # safe on v5e/v6e, headroom on v7x
        ),
    )(img, wc, bc, w1b, b1f, w2p, b2p)

    return out[:, 0, :4]


def _reference_forward(x, wconv, bconv, w1, b1, w2, b2):
    """Pure-JAX f32 reference of the same forward pass (for validation)."""
    conv = jax.lax.conv_general_dilated(
        x, wconv, window_strides=(1, 1), padding="SAME",
        dimension_numbers=("NCHW", "OIHW", "NCHW"),
        precision=jax.lax.Precision.HIGHEST)
    conv = jnp.maximum(conv + bconv.reshape(1, -1, 1, 1), 0.0)
    feats = conv.mean(axis=(2, 3))                                 # (N, F) GAP
    hdn = jnp.maximum(feats @ w1 + b1, 0.0)
    return jax.nn.sigmoid(hdn @ w2 + b2)


if __name__ == "__main__":
    # Small shapes consistent with the module: RGB image input, resnet18-style
    # 512-dim feature vector, head 512 -> 512 -> 4.
    N, C, H, W = 2, 3, 16, 16
    FEAT = 512     # FeatureExtractor("resnet18").num_features
    HID = 512      # head hidden width

    key = jax.random.PRNGKey(0)
    kx, kwc, kbc, kw1, kb1, kw2, kb2 = jax.random.split(key, 7)

    x = jax.random.normal(kx, (N, C, H, W), jnp.float32)

    # Deterministic synthetic parameters (shapes implied by the module).
    wconv = jax.random.normal(kwc, (FEAT, C, 3, 3), jnp.float32) * 0.1   # conv stem
    bconv = jax.random.normal(kbc, (FEAT,), jnp.float32) * 0.1
    w1 = jax.random.normal(kw1, (FEAT, HID), jnp.float32) * 0.05         # Linear(512, 512)
    b1 = jax.random.normal(kb1, (HID,), jnp.float32) * 0.05
    w2 = jax.random.normal(kw2, (HID, 4), jnp.float32) * 0.05            # Linear(512, 4)
    b2 = jax.random.normal(kb2, (4,), jnp.float32) * 0.05

    fwd = jax.jit(swimnet_forward)
    bbox = fwd(x, wconv, bconv, w1, b1, w2, b2)
    jax.block_until_ready(bbox)

    ref = _reference_forward(x, wconv, bconv, w1, b1, w2, b2)
    max_err = float(jnp.max(jnp.abs(bbox - ref)))

    assert bbox.shape == (N, 4)
    assert bool(jnp.all((bbox >= 0.0) & (bbox <= 1.0)))  # sigmoid range
    assert max_err < 5e-2, f"mismatch vs f32 reference: {max_err}"
    print("KERNEL_OK")
</pallas_src>

<mosaic_0001>
module attributes {stable_mosaic.version = 11 : i64} {
  func.func @_swimnet_kernel(%arg0: i32, %arg1: memref<1x144x18xf32, #tpu.memory_space<vmem>>, %arg2: memref<512x72xbf16, #tpu.memory_space<vmem>>, %arg3: memref<512x1xf32, #tpu.memory_space<vmem>>, %arg4: memref<512x512xbf16, #tpu.memory_space<vmem>>, %arg5: memref<1x512xf32, #tpu.memory_space<vmem>>, %arg6: memref<512x128xbf16, #tpu.memory_space<vmem>>, %arg7: memref<1x128xf32, #tpu.memory_space<vmem>>, %arg8: memref<1x1x128xf32, #tpu.memory_space<vmem>>, %arg9: memref<512x16xf32, #tpu.memory_space<vmem>>) attributes {dimension_semantics = [#tpu.dimension_semantics<parallel>], iteration_bounds = array<i64: 2>, scalar_prefetch = 0 : i64, scratch_operands = 1 : i64, tpu.core_type = #tpu.core_type<tc>, window_params = [{transform_indices = @transform_0, window_bounds = array<i64: 1, 144, 18>}, {pipeline_mode = #tpu.pipeline_mode<synchronous>, transform_indices = @transform_1, window_bounds = array<i64: 512, 72>}, {pipeline_mode = #tpu.pipeline_mode<synchronous>, transform_indices = @transform_2, window_bounds = array<i64: 512, 1>}, {pipeline_mode = #tpu.pipeline_mode<synchronous>, transform_indices = @transform_3, window_bounds = array<i64: 512, 512>}, {pipeline_mode = #tpu.pipeline_mode<synchronous>, transform_indices = @transform_4, window_bounds = array<i64: 1, 512>}, {pipeline_mode = #tpu.pipeline_mode<synchronous>, transform_indices = @transform_5, window_bounds = array<i64: 512, 128>}, {pipeline_mode = #tpu.pipeline_mode<synchronous>, transform_indices = @transform_6, window_bounds = array<i64: 1, 128>}, {transform_indices = @transform_7, window_bounds = array<i64: 1, 1, 128>}]} {
    %cst = arith.constant 0.000000e+00 : f32
    %0 = vector.broadcast %cst : f32 to vector<512x16xf32>
    %c0 = arith.constant 0 : index
    %c0_0 = arith.constant 0 : index
    %1 = vector.load %arg9[%c0, %c0_0] : memref<512x16xf32, #tpu.memory_space<vmem>>, vector<512x16xf32>
    tpu.vector_store %arg9[%c0, %c0_0], %0 {strides = array<i32>} : memref<512x16xf32, #tpu.memory_space<vmem>>, vector<512x16xf32>,
    %c0_i32 = arith.constant 0 : i32
    %c16_i32 = arith.constant 16 : i32
    %2 = arith.addi %c0_i32, %c16_i32 : i32
    %c1_i32 = arith.constant 1 : i32
    scf.for %arg10 = %c0_i32 to %2 step %c1_i32  : i32 {
      %c1_i32_21 = arith.constant 1 : i32
      %26 = arith.muli %arg10, %c1_i32_21 : i32
      %c0_i32_22 = arith.constant 0 : i32
      %27 = arith.addi %c0_i32_22, %26 : i32
      %c8_i32 = arith.constant 8 : i32
      %28 = arith.muli %27, %c8_i32 : i32
      %29 = tpu.assume_multiple %28, 8 : i32
      %c0_23 = arith.constant 0 : index
      %30 = arith.index_cast %29 : i32 to index
      %c0_24 = arith.constant 0 : index
      %31 = vector.load %arg1[%c0_23, %30, %c0_24] : memref<1x144x18xf32, #tpu.memory_space<vmem>>, vector<1x24x18xf32>
      %32 = vector.shape_cast %31 : vector<1x24x18xf32> to vector<24x18xf32>
      %33 = vector.extract_strided_slice %32 {offsets = [0, 0], sizes = [24, 16], strides = [1, 1]} : vector<24x18xf32> to vector<24x16xf32>
      %34 = vector.extract_strided_slice %32 {offsets = [0, 1], sizes = [24, 16], strides = [1, 1]} : vector<24x18xf32> to vector<24x16xf32>
      %35 = vector.extract_strided_slice %32 {offsets = [0, 2], sizes = [24, 16], strides = [1, 1]} : vector<24x18xf32> to vector<24x16xf32>
      %36 = tpu.concatenate %33, %34, %35 in 0 : vector<24x16xf32>, vector<24x16xf32>, vector<24x16xf32> -> vector<72x16xf32>
      %37 = arith.truncf %36 : vector<72x16xf32> to vector<72x16xbf16>
      %c0_25 = arith.constant 0 : index
      %c0_26 = arith.constant 0 : index
      %38 = vector.load %arg2[%c0_25, %c0_26] : memref<512x72xbf16, #tpu.memory_space<vmem>>, vector<512x72xbf16>
      %cst_27 = arith.constant dense<0.000000e+00> : vector<512x16xf32>
      %39 = tpu.matmul %38, %37, %cst_27 {dimension_numbers = #tpu.dot_dimension_numbers<[1], [0], [0], [1], [0, 0, 1, 1], [], []>} : vector<512x72xbf16>, vector<72x16xbf16>, vector<512x16xf32> -> vector<512x16xf32>
      %c0_28 = arith.constant 0 : index
      %c0_29 = arith.constant 0 : index
      %40 = vector.load %arg9[%c0_28, %c0_29] : memref<512x16xf32, #tpu.memory_space<vmem>>, vector<512x16xf32>
      %c0_30 = arith.constant 0 : index
      %c0_31 = arith.constant 0 : index
      %41 = vector.load %arg3[%c0_30, %c0_31] : memref<512x1xf32, #tpu.memory_space<vmem>>, vector<512x1xf32>
      %42 = vector.broadcast %41 : vector<512x1xf32> to vector<512x16xf32>
      %43 = arith.addf %39, %42 : vector<512x16xf32>
      %cst_32 = arith.constant 0.000000e+00 : f32
      %44 = vector.broadcast %cst_32 : f32 to vector<512x16xf32>
      %45 = arith.maximumf %43, %44 : vector<512x16xf32>
      %46 = arith.addf %40, %45 : vector<512x16xf32>
      %c0_33 = arith.constant 0 : index
      %c0_34 = arith.constant 0 : index
      %47 = vector.load %arg9[%c0_33, %c0_34] : memref<512x16xf32, #tpu.memory_space<vmem>>, vector<512x16xf32>
      tpu.vector_store %arg9[%c0_33, %c0_34], %46 {strides = array<i32>} : memref<512x16xf32, #tpu.memory_space<vmem>>, vector<512x16xf32>,
    }
    %c16_i32_1 = arith.constant 16 : i32
    %cst_2 = arith.constant 3.906250e-03 : f32
    %3 = vector.broadcast %cst_2 : f32 to vector<1x16xf32>
    %c0_3 = arith.constant 0 : index
    %c0_4 = arith.constant 0 : index
    %4 = vector.load %arg9[%c0_3, %c0_4] : memref<512x16xf32, #tpu.memory_space<vmem>>, vector<512x16xf32>
    %cst_5 = arith.constant dense<0.000000e+00> : vector<1x512xf32>
    %5 = tpu.matmul %3, %4, %cst_5 {dimension_numbers = #tpu.dot_dimension_numbers<[1], [1], [0], [0], [0, 0, 1, 0], [], []>} : vector<1x16xf32>, vector<512x16xf32>, vector<1x512xf32> -> vector<1x512xf32>
    %6 = arith.truncf %5 : vector<1x512xf32> to vector<1x512xbf16>
    %c0_6 = arith.constant 0 : index
    %c0_7 = arith.constant 0 : index
    %7 = vector.load %arg4[%c0_6, %c0_7] : memref<512x512xbf16, #tpu.memory_space<vmem>>, vector<512x512xbf16>
    %cst_8 = arith.constant dense<0.000000e+00> : vector<1x512xf32>
    %8 = tpu.matmul %6, %7, %cst_8 {dimension_numbers = #tpu.dot_dimension_numbers<[1], [0], [0], [1], [0, 0, 1, 1], [], []>} : vector<1x512xbf16>, vector<512x512xbf16>, vector<1x512xf32> -> vector<1x512xf32>
    %c0_9 = arith.constant 0 : index
    %c0_10 = arith.constant 0 : index
    %9 = vector.load %arg5[%c0_9, %c0_10] : memref<1x512xf32, #tpu.memory_space<vmem>>, vector<1x512xf32>
    %10 = arith.addf %8, %9 : vector<1x512xf32>
    %cst_11 = arith.constant 0.000000e+00 : f32
    %11 = vector.broadcast %cst_11 : f32 to vector<1x512xf32>
    %12 = arith.maximumf %10, %11 : vector<1x512xf32>
    %13 = arith.truncf %12 : vector<1x512xf32> to vector<1x512xbf16>
    %c0_12 = arith.constant 0 : index
    %c0_13 = arith.constant 0 : index
    %14 = vector.load %arg6[%c0_12, %c0_13] : memref<512x128xbf16, #tpu.memory_space<vmem>>, vector<512x128xbf16>
    %cst_14 = arith.constant dense<0.000000e+00> : vector<1x128xf32>
    %15 = tpu.matmul %13, %14, %cst_14 {dimension_numbers = #tpu.dot_dimension_numbers<[1], [0], [0], [1], [0, 0, 1, 1], [], []>} : vector<1x512xbf16>, vector<512x128xbf16>, vector<1x128xf32> -> vector<1x128xf32>
    %c0_15 = arith.constant 0 : index
    %c0_16 = arith.constant 0 : index
    %16 = vector.load %arg7[%c0_15, %c0_16] : memref<1x128xf32, #tpu.memory_space<vmem>>, vector<1x128xf32>
    %17 = arith.addf %15, %16 : vector<1x128xf32>
    %18 = arith.negf %17 : vector<1x128xf32>
    %19 = math.exp %18 : vector<1x128xf32>
    %cst_17 = arith.constant 1.000000e+00 : f32
    %20 = vector.broadcast %cst_17 : f32 to vector<1x128xf32>
    %21 = arith.addf %20, %19 : vector<1x128xf32>
    %22 = arith.divf %20, %21 : vector<1x128xf32>
    %c0_18 = arith.constant 0 : index
    %c0_19 = arith.constant 0 : index
    %c0_20 = arith.constant 0 : index
    %23 = vector.load %arg8[%c0_18, %c0_19, %c0_20] : memref<1x1x128xf32, #tpu.memory_space<vmem>>, vector<1x1x128xf32>
    %24 = vector.shape_cast %23 : vector<1x1x128xf32> to vector<1x128xf32>
    %25 = vector.shape_cast %22 : vector<1x128xf32> to vector<1x1x128xf32>
    tpu.vector_store %arg8[%c0_18, %c0_19, %c0_20], %25 {strides = array<i32>} : memref<1x1x128xf32, #tpu.memory_space<vmem>>, vector<1x1x128xf32>,
    return
  }
  func.func @transform_0(%arg0: i32) -> (i32, i32, i32) {
    %c0_i32 = arith.constant 0 : i32
    %c0_i32_0 = arith.constant 0 : i32
    %c0_i32_1 = arith.constant 0 : i32
    return %arg0, %c0_i32, %c0_i32_0 : i32, i32, i32
  }
  func.func @transform_1(%arg0: i32) -> (i32, i32) {
    %c0_i32 = arith.constant 0 : i32
    %c0_i32_0 = arith.constant 0 : i32
    %c0_i32_1 = arith.constant 0 : i32
    return %c0_i32, %c0_i32_0 : i32, i32
  }
  func.func @transform_2(%arg0: i32) -> (i32, i32) {
    %c0_i32 = arith.constant 0 : i32
    %c0_i32_0 = arith.constant 0 : i32
    %c0_i32_1 = arith.constant 0 : i32
    return %c0_i32, %c0_i32_0 : i32, i32
  }
  func.func @transform_3(%arg0: i32) -> (i32, i32) {
    %c0_i32 = arith.constant 0 : i32
    %c0_i32_0 = arith.constant 0 : i32
    %c0_i32_1 = arith.constant 0 : i32
    return %c0_i32, %c0_i32_0 : i32, i32
  }
  func.func @transform_4(%arg0: i32) -> (i32, i32) {
    %c0_i32 = arith.constant 0 : i32
    %c0_i32_0 = arith.constant 0 : i32
    %c0_i32_1 = arith.constant 0 : i32
    return %c0_i32, %c0_i32_0 : i32, i32
  }
  func.func @transform_5(%arg0: i32) -> (i32, i32) {
    %c0_i32 = arith.constant 0 : i32
    %c0_i32_0 = arith.constant 0 : i32
    %c0_i32_1 = arith.constant 0 : i32
    return %c0_i32, %c0_i32_0 : i32, i32
  }
  func.func @transform_6(%arg0: i32) -> (i32, i32) {
    %c0_i32 = arith.constant 0 : i32
    %c0_i32_0 = arith.constant 0 : i32
    %c0_i32_1 = arith.constant 0 : i32
    return %c0_i32, %c0_i32_0 : i32, i32
  }
  func.func @transform_7(%arg0: i32) -> (i32, i32, i32) {
    %c0_i32 = arith.constant 0 : i32
    %c0_i32_0 = arith.constant 0 : i32
    %c0_i32_1 = arith.constant 0 : i32
    return %arg0, %c0_i32, %c0_i32_0 : i32, i32, i32
  }
}

</mosaic_0001>

<bundles_post_ra>
// kernel: swimnet_forward.1
= control target key start
LH: loop header
LB: loop body
LE: loop exit
PB: predicated region body
PF: predicated region fallthrough
CT: control target
= control target key end

     0   :  { %s6262_s0 = inlined_call_operand.vmem [shape: f32[2,144,18], index: 0, kind: input, shape index: {}]   ;;  %s6263_s1 = inlined_call_operand.vmem [shape: bf16[512,72], index: 1, kind: input, shape index: {}]   ;;  %s6264_s2 = inlined_call_operand.vmem [shape: f32[512,1], index: 2, kind: input, shape index: {}]   ;;  %s6265_s3 = inlined_call_operand.vmem [shape: bf16[512,512], index: 3, kind: input, shape index: {}]   ;;  %s6266_s4 = inlined_call_operand.vmem [shape: f32[1,512], index: 4, kind: input, shape index: {}]   ;;  %s6267_s5 = inlined_call_operand.vmem [shape: bf16[512,128], index: 5, kind: input, shape index: {}]   ;;  %s6268_s6 = inlined_call_operand.vmem [shape: f32[1,128], index: 6, kind: input, shape index: {}]   ;;  %s6269_s7 = inlined_call_operand.hbm [shape: f32[2,1,128], index: 7, kind: output, shape index: {}]  }
   0x1   :  { %6271 = sst [smem:[#allocation7_spill]] %s6262_s0 }
   0x2   :  { %12 = vsyncpa [#allocation4], 0 }
   0x3   :  { %14 = vsyncpa [#allocation4 + $0x1], 0  ;;  %s4525_s24 = smov 0   ;;  %s4527_s25 = smov 0  }
   0x4   :  { %s4529_s26 = smov 0   ;;  %s4531_s27 = smov 0  }
   0x5 LB: > { %s4546_s28 = sadd.s32 4294967295, %s4474_s27   ;;  %s3254_s29 = sadd.s32 4294967294, %s4474_s27   ;;  %s4474_s27 = sphi %s4531_s27, %s6281_s27   ;;  %s4470_s26 = sphi %s4529_s26, %s6280_s26   ;;  %s4466_s25 = sphi %s4527_s25, %s6279_s25   ;;  %s4462_s24 = sphi %s4525_s24, %s6278_s24  }
   0x6   : > { %s4550_s30 = sadd.s32 1, %s4474_s27   ;;  %s179_s8 = sadd.s32 1, %s4470_s26 }
   0x7   : > { %s176_s9 = ssub.s32 %s4474_s27, %s4550_s30  ;;  %p189_p0 = scmp.ne.s32.totalorder %s4470_s26, %s4466_s25 }
   0x8   : > { %p177_p1 = scmp.eq.s32.totalorder %s176_s9, 0  ;;  %p190_p2 = scmp.eq.s32.totalorder %s4546_s28, 1 }
   0x9   : > { %p195_p3 = scmp.ne.s32.totalorder %s4466_s25, %s4462_s24  ;;  %p196_p4 = scmp.eq.s32.totalorder %s3254_s29, 1 }
   0xa   : > { %s4561_s10 = scalar_select %p177_p1, %s4470_s26, %s179_s8  }
   0xb   : > { %p4563_p5 = por %p190_p2, %p189_p0  ;;  %p4567_p6 = por %p196_p4, %p195_p3 }
   0xc   : > { %p3257_p7 = scmp.ge.s32.totalorder %s4474_s27, 1  ;;  %p240_p8 = scmp.lt.s32.totalorder %s4474_s27, 3 }
   0xe   : > { %p241_p9 = pnand %p3257_p7, %p240_p8 }
   0xf   : > { %s6270_s13 = sand.u32 (!%p241_p9), 1, %s4466_s25   ;;  %p271_p10 = scmp.lt.s32.totalorder (!%p241_p9), %s4546_s28, 1 }
  0x10   : > { %244 = sbr.rel (%p241_p9) target bundleno = 1069 (0x42d), region = 48  ;;  %s6274_s0 = sld [smem:[#allocation7_spill]] (!%p241_p9) }
  0x11   : > { %s4711_s19 = scalar_lea.vmem (!%p241_p9), [#allocation3], %s6270_s13  ;;  %s4713_s20 = smov (!%p241_p9), 0  }
  0x15   : > { %vm277_vm0 = vcmask 130048   ;;  %v4480_v0 = vmov 0.0   ;;  %s272_s14 = scalar_select %p271_p10, %s4546_s28, 1 }
  0x16   : > { %278 = vst.msk [vmem:[#allocation2] sm:$0xff] %vm277_vm0, %v4480_v0 }
  0x17   : > { %279 = vst.msk [vmem:[#allocation2 + $0x8] sm:$0xff] %vm277_vm0, %v4480_v0  ;;  %s4338_s15 = smul.u32 144, %s272_s14 }
  0x18   : > { %280 = vst.msk [vmem:[#allocation2 + $0x10] sm:$0xff] %vm277_vm0, %v4480_v0 }
  0x19   : > { %281 = vst.msk [vmem:[#allocation2 + $0x18] sm:$0xff] %vm277_vm0, %v4480_v0  ;;  %s4589_s18 = scalar_lea.vmem %s6274_s0, %s4338_s15 }
  0x1a   : > { %282 = vst.msk [vmem:[#allocation2 + $0x20] sm:$0xff] %vm277_vm0, %v4480_v0 }
  0x1b   : > { %283 = vst.msk [vmem:[#allocation2 + $0x28] sm:$0xff] %vm277_vm0, %v4480_v0 }
  0x1c   : > { %284 = vst.msk [vmem:[#allocation2 + $0x30] sm:$0xff] %vm277_vm0, %v4480_v0 }
  0x1d   : > { %285 = vst.msk [vmem:[#allocation2 + $0x38] sm:$0xff] %vm277_vm0, %v4480_v0 }
  0x1e   : > { %286 = vst.msk [vmem:[#allocation2 + $0x40] sm:$0xff] %vm277_vm0, %v4480_v0 }
  0x1f   : > { %287 = vst.msk [vmem:[#allocation2 + $0x48] sm:$0xff] %vm277_vm0, %v4480_v0 }
  0x20   : > { %288 = vst.msk [vmem:[#allocation2 + $0x50] sm:$0xff] %vm277_vm0, %v4480_v0 }
  0x21   : > { %289 = vst.msk [vmem:[#allocation2 + $0x58] sm:$0xff] %vm277_vm0, %v4480_v0 }
  0x22   : > { %290 = vst.msk [vmem:[#allocation2 + $0x60] sm:$0xff] %vm277_vm0, %v4480_v0 }
  0x23   : > { %291 = vst.msk [vmem:[#allocation2 + $0x68] sm:$0xff] %vm277_vm0, %v4480_v0 }
  0x24   : > { %292 = vst.msk [vmem:[#allocation2 + $0x70] sm:$0xff] %vm277_vm0, %v4480_v0 }
  0x25   : > { %293 = vst.msk [vmem:[#allocation2 + $0x78] sm:$0xff] %vm277_vm0, %v4480_v0 }
  0x26   : > { %294 = vst.msk [vmem:[#allocation2 + $0x80] sm:$0xff] %vm277_vm0, %v4480_v0 }
  0x27   : > { %295 = vst.msk [vmem:[#allocation2 + $0x88] sm:$0xff] %vm277_vm0, %v4480_v0 }
  0x28   : > { %296 = vst.msk [vmem:[#allocation2 + $0x90] sm:$0xff] %vm277_vm0, %v4480_v0 }
  0x29   : > { %297 = vst.msk [vmem:[#allocation2 + $0x98] sm:$0xff] %vm277_vm0, %v4480_v0 }
  0x2a   : > { %298 = vst.msk [vmem:[#allocation2 + $0xa0] sm:$0xff] %vm277_vm0, %v4480_v0 }
  0x2b   : > { %299 = vst.msk [vmem:[#allocation2 + $0xa8] sm:$0xff] %vm277_vm0, %v4480_v0 }
  0x2c   : > { %300 = vst.msk [vmem:[#allocation2 + $0xb0] sm:$0xff] %vm277_vm0, %v4480_v0 }
  0x2d   : > { %301 = vst.msk [vmem:[#allocation2 + $0xb8] sm:$0xff] %vm277_vm0, %v4480_v0 }
  0x2e   : > { %302 = vst.msk [vmem:[#allocation2 + $0xc0] sm:$0xff] %vm277_vm0, %v4480_v0 }
  0x2f   : > { %303 = vst.msk [vmem:[#allocation2 + $0xc8] sm:$0xff] %vm277_vm0, %v4480_v0 }
  0x30   : > { %304 = vst.msk [vmem:[#allocation2 + $0xd0] sm:$0xff] %vm277_vm0, %v4480_v0 }
  0x31   : > { %305 = vst.msk [vmem:[#allocation2 + $0xd8] sm:$0xff] %vm277_vm0, %v4480_v0 }
  0x32   : > { %306 = vst.msk [vmem:[#allocation2 + $0xe0] sm:$0xff] %vm277_vm0, %v4480_v0 }
  0x33   : > { %307 = vst.msk [vmem:[#allocation2 + $0xe8] sm:$0xff] %vm277_vm0, %v4480_v0 }
  0x34   : > { %308 = vst.msk [vmem:[#allocation2 + $0xf0] sm:$0xff] %vm277_vm0, %v4480_v0 }
  0x35   : > { %309 = vst.msk [vmem:[#allocation2 + $0xf8] sm:$0xff] %vm277_vm0, %v4480_v0 }
  0x36   : > { %310 = vst.msk [vmem:[#allocation2 + $0x100] sm:$0xff] %vm277_vm0, %v4480_v0 }
  0x37   : > { %311 = vst.msk [vmem:[#allocation2 + $0x108] sm:$0xff] %vm277_vm0, %v4480_v0 }
  0x38   : > { %312 = vst.msk [vmem:[#allocation2 + $0x110] sm:$0xff] %vm277_vm0, %v4480_v0 }
  0x39   : > { %313 = vst.msk [vmem:[#allocation2 + $0x118] sm:$0xff] %vm277_vm0, %v4480_v0 }
  0x3a   : > { %314 = vst.msk [vmem:[#allocation2 + $0x120] sm:$0xff] %vm277_vm0, %v4480_v0 }
  0x3b   : > { %315 = vst.msk [vmem:[#allocation2 + $0x128] sm:$0xff] %vm277_vm0, %v4480_v0 }
  0x3c   : > { %316 = vst.msk [vmem:[#allocation2 + $0x130] sm:$0xff] %vm277_vm0, %v4480_v0 }
  0x3d   : > { %317 = vst.msk [vmem:[#allocation2 + $0x138] sm:$0xff] %vm277_vm0, %v4480_v0 }
  0x3e   : > { %318 = vst.msk [vmem:[#allocation2 + $0x140] sm:$0xff] %vm277_vm0, %v4480_v0 }
  0x3f   : > { %319 = vst.msk [vmem:[#allocation2 + $0x148] sm:$0xff] %vm277_vm0, %v4480_v0 }
  0x40   : > { %320 = vst.msk [vmem:[#allocation2 + $0x150] sm:$0xff] %vm277_vm0, %v4480_v0 }
  0x41   : > { %321 = vst.msk [vmem:[#allocation2 + $0x158] sm:$0xff] %vm277_vm0, %v4480_v0 }
  0x42   : > { %322 = vst.msk [vmem:[#allocation2 + $0x160] sm:$0xff] %vm277_vm0, %v4480_v0 }
  0x43   : > { %323 = vst.msk [vmem:[#allocation2 + $0x168] sm:$0xff] %vm277_vm0, %v4480_v0 }
  0x44   : > { %324 = vst.msk [vmem:[#allocation2 + $0x170] sm:$0xff] %vm277_vm0, %v4480_v0 }
  0x45   : > { %325 = vst.msk [vmem:[#allocation2 + $0x178] sm:$0xff] %vm277_vm0, %v4480_v0 }
  0x46   : > { %326 = vst.msk [vmem:[#allocation2 + $0x180] sm:$0xff] %vm277_vm0, %v4480_v0 }
  0x47   : > { %327 = vst.msk [vmem:[#allocation2 + $0x188] sm:$0xff] %vm277_vm0, %v4480_v0 }
  0x48   : > { %328 = vst.msk [vmem:[#allocation2 + $0x190] sm:$0xff] %vm277_vm0, %v4480_v0 }
  0x49   : > { %329 = vst.msk [vmem:[#allocation2 + $0x198] sm:$0xff] %vm277_vm0, %v4480_v0 }
  0x4a   : > { %330 = vst.msk [vmem:[#allocation2 + $0x1a0] sm:$0xff] %vm277_vm0, %v4480_v0 }
  0x4b   : > { %331 = vst.msk [vmem:[#allocation2 + $0x1a8] sm:$0xff] %vm277_vm0, %v4480_v0 }
  0x4c   : > { %332 = vst.msk [vmem:[#allocation2 + $0x1b0] sm:$0xff] %vm277_vm0, %v4480_v0 }
  0x4d   : > { %333 = vst.msk [vmem:[#allocation2 + $0x1b8] sm:$0xff] %vm277_vm0, %v4480_v0 }
  0x4e   : > { %334 = vst.msk [vmem:[#allocation2 + $0x1c0] sm:$0xff] %vm277_vm0, %v4480_v0 }
  0x4f   : > { %335 = vst.msk [vmem:[#allocation2 + $0x1c8] sm:$0xff] %vm277_vm0, %v4480_v0 }
  0x50   : > { %336 = vst.msk [vmem:[#allocation2 + $0x1d0] sm:$0xff] %vm277_vm0, %v4480_v0 }
  0x51   : > { %337 = vst.msk [vmem:[#allocation2 + $0x1d8] sm:$0xff] %vm277_vm0, %v4480_v0 }
  0x52   : > { %338 = vst.msk [vmem:[#allocation2 + $0x1e0] sm:$0xff] %vm277_vm0, %v4480_v0 }
  0x53   : > { %339 = vst.msk [vmem:[#allocation2 + $0x1e8] sm:$0xff] %vm277_vm0, %v4480_v0 }
  0x54   : > { %340 = vst.msk [vmem:[#allocation2 + $0x1f0] sm:$0xff] %vm277_vm0, %v4480_v0 }
  0x55   : > { %341 = vst.msk [vmem:[#allocation2 + $0x1f8] sm:$0xff] %vm277_vm0, %v4480_v0 }
  0x56 LB: >> { %v507_v1 = vld [vmem:[%s6264_s2] sm:$0xff]  ;;  %v4481_v2 = vmov 0   ;;  %s3259_s23 = sshll.u32 %s4478_s20, 3  ;;  %s4482_s8 = smov 126   ;;  %v508_v7 = vld [vmem:[%s6264_s2 + $0x8] sm:$0xff]  ;;  %v510_v10 = vld [vmem:[%s6264_s2 + $0x18] sm:$0xff]  ;;  %s4478_s20 = sphi %s4713_s20, %s347_s20  }
  0x57   : >> { %4401 = vset.pattern.permute.xlu2 %v4481_v2  ;;  %4403 = vset.pattern.permute.xlu1 %v4481_v2  ;;  %s349_s29 = scalar_lea.vmem %s4589_s18, %s3259_s23  ;;  %s4483_s9 = smov 127   ;;  %v511_v9 = vld [vmem:[%s6264_s2 + $0x20] sm:$0xff]  ;;  %v509_v11 = vld [vmem:[%s6264_s2 + $0x10] sm:$0xff]  ;;  %v512_v13 = vld [vmem:[%s6264_s2 + $0x28] sm:$0xff]  ;;  %vm1148_vm1 = vcmask 1043456   ;;  %vm1051_vm2 = vcmask 588800  }
  0x58   : >> { %573 = vperm.xlu2 %4401, %v507_v1   ;;  %4402 = vset.pattern.permute.xlu0 %v4481_v2  ;;  %v350_v3 = vld [vmem:[%s349_s29] sm:$0xff]  ;;  %v351_v4 = vld [vmem:[%s349_s29 + $0x8] sm:$0xff]  ;;  %v4728_v8 = vld [vmem:[%s349_s29 + $0x10] sm:$0xff]  ;;  %s347_s20 = sadd.s32 1, %s4478_s20  }
  0x59   : >> { %v4396_v5 = vpack.i.bf16 %v351_v4, %v350_v3  ;;  %v4723_v6 = vpack.c.bf16 %v351_v4, %v350_v3  ;;  %v513_v12 = vld [vmem:[%s6264_s2 + $0x30] sm:$0xff]  ;;  %v514_v14 = vld [vmem:[%s6264_s2 + $0x38] sm:$0xff]  ;;  %v516_v15 = vld [vmem:[%s6264_s2 + $0x48] sm:$0xff]  ;;  %p344_p11 = scmp.ge.s32.totalorder %s347_s20, 16  }
  0x5a   : >> { %v515_v16 = vld [vmem:[%s6264_s2 + $0x40] sm:$0xff]  ;;  %v517_v17 = vld [vmem:[%s6264_s2 + $0x50] sm:$0xff]  ;;  %v518_v19 = vld [vmem:[%s6264_s2 + $0x58] sm:$0xff]  ;;  %s3188_s16 = scalar_lea.hbm (%p344_p11), %s6269_s7, %s4546_s28  ;;  %s3190_s17 = sshll.u32 (%p344_p11), %s4711_s19, 4  ;;  %s3191_s17 = int_to_ptr.vmem [resolvable:$true] %s3190_s17 }
  0x5b   : >> { %4397 = vrot.lane.b32.xlu1 %v4396_v5, %s4482_s8  ;;  %4392 = vrot.lane.b32.xlu0 %v4396_v5, %s4483_s9  ;;  %v519_v18 = vld [vmem:[%s6264_s2 + $0x60] sm:$0xff]  ;;  %v520_v20 = vld [vmem:[%s6264_s2 + $0x68] sm:$0xff]  ;;  %s3192_s13 = sshll.u32 (%p344_p11), %s3188_s16, 4  ;;  %s6277_s28 = sand.u32 (%p344_p11), 1, %s4466_s25   ;;  %s3193_s13 = int_to_ptr.hbm [resolvable:$true] %s3192_s13 }
  0x5c   : >> { %v522_v21 = vld [vmem:[%s6264_s2 + $0x78] sm:$0xff]  ;;  %v521_v22 = vld [vmem:[%s6264_s2 + $0x70] sm:$0xff]  ;;  %v523_v23 = vld [vmem:[%s6264_s2 + $0x80] sm:$0xff]  ;;  %s3180_s21 = scalar_lea.sflag (%p344_p11), [#allocation4], %s6277_s28  ;;  %s4422_s22 = sshra.s32 (%p344_p11), %s3193_s13, 4  ;;  %s4423_s22 = int_to_ptr.hbm [resolvable:$true] %s4422_s22 }
  0x5d   : >> { %v525_v24 = vld [vmem:[%s6264_s2 + $0x90] sm:$0xff]  ;;  %v524_v25 = vld [vmem:[%s6264_s2 + $0x88] sm:$0xff]  ;;  %v526_v26 = vld [vmem:[%s6264_s2 + $0x98] sm:$0xff]  ;;  %s4424_s23 = scalar_lea.hbm (%p344_p11), %s4423_s22, 1  ;;  %s4428_s29 = scalar_lea.hbm (%p344_p11), %s6269_s7, 2 }
  0x5e   : >> { %v528_v27 = vld [vmem:[%s6264_s2 + $0xa8] sm:$0xff]  ;;  %v527_v28 = vld [vmem:[%s6264_s2 + $0xa0] sm:$0xff]  ;;  %v529_v29 = vld [vmem:[%s6264_s2 + $0xb0] sm:$0xff]  ;;  %p4425_p12 = scmp.ne.s32.totalorder (%p344_p11), %s4423_s22, %s4424_s23  ;;  %p4429_p1 = scmp.lt.s32.totalorder (%p344_p11), %s4423_s22, %s6269_s7 }
  0x5f   : >> { %v531_v30 = vld [vmem:[%s6264_s2 + $0xc0] sm:$0xff]  ;;  %v530_v31 = vld [vmem:[%s6264_s2 + $0xb8] sm:$0xff]  ;;  %v532_v32 = vld [vmem:[%s6264_s2 + $0xc8] sm:$0xff]  ;;  %p4430_p2 = scmp.lt.s32.totalorder (%p344_p11), %s4428_s29, %s4424_s23 }
  0x60   : >> { %578 = vperm.xlu2 %4401, %v508_v7   ;;  %v534_v33 = vld [vmem:[%s6264_s2 + $0xd8] sm:$0xff]  ;;  %v533_v34 = vld [vmem:[%s6264_s2 + $0xd0] sm:$0xff]  ;;  %v535_v35 = vld [vmem:[%s6264_s2 + $0xe0] sm:$0xff]  ;;  %p4426_p13 = pnand (%p344_p11), %p4425_p12, %p4563_p5 }
  0x61   : >> { %v537_v36 = vld [vmem:[%s6264_s2 + $0xf0] sm:$0xff]  ;;  %v536_v37 = vld [vmem:[%s6264_s2 + $0xe8] sm:$0xff]  ;;  %v538_v38 = vld [vmem:[%s6264_s2 + $0xf8] sm:$0xff]  ;;  %p4431_p3 = por (%p344_p11), %p4430_p2, %p4429_p1 }
  0x62   : >> { %v540_v39 = vld [vmem:[%s6264_s2 + $0x108] sm:$0xff]  ;;  %v539_v40 = vld [vmem:[%s6264_s2 + $0x100] sm:$0xff]  ;;  %v541_v41 = vld [vmem:[%s6264_s2 + $0x110] sm:$0xff]  ;;  %p4427_p0 = pneg (%p344_p11), %p4426_p13 }
  0x63   : >> { %369 = vrot.lane.b32.xlu1 %v4728_v8, %s4482_s8  ;;  %360 = vrot.lane.b32.xlu0 %v4728_v8, %s4483_s9  ;;  %v543_v42 = vld [vmem:[%s6264_s2 + $0x120] sm:$0xff]  ;;  %v542_v43 = vld [vmem:[%s6264_s2 + $0x118] sm:$0xff] }
  0x64   : >> { %v544_v44 = vld [vmem:[%s6264_s2 + $0x128] sm:$0xff]  ;;  %v546_v45 = vld [vmem:[%s6264_s2 + $0x138] sm:$0xff]  ;;  %v545_v47 = vld [vmem:[%s6264_s2 + $0x130] sm:$0xff]  ;;  %p4432_p4 = pnand (%p344_p11), %p4431_p3, %p4427_p0 }
  0x65   : >> { %v547_v48 = vld [vmem:[%s6264_s2 + $0x140] sm:$0xff]  ;;  %v549_v49 = vld [vmem:[%s6264_s2 + $0x150] sm:$0xff]  ;;  %v548_v53 = vld [vmem:[%s6264_s2 + $0x148] sm:$0xff] }
  0x66   : >> { %v550_v54 = vld [vmem:[%s6264_s2 + $0x158] sm:$0xff]  ;;  %v552_v55 = vld [vmem:[%s6264_s2 + $0x168] sm:$0xff]  ;;  %v551_v62 = vld [vmem:[%s6264_s2 + $0x160] sm:$0xff] }
  0x67   : >> { %v553_v63 = vld [vmem:[%s6264_s2 + $0x170] sm:$0xff]  ;;  %v555_v3 = vld [vmem:[%s6264_s2 + $0x180] sm:$0xff] }
  0x68   : >> { %593 = vperm.xlu2 %4401, %v511_v9   ;;  %v554_v9 = vld [vmem:[%s6264_s2 + $0x178] sm:$0xff] }
  0x6b   : >> { %588 = vperm.xlu1 %4403, %v510_v10   ;;  %583 = vperm.xlu0 %4402, %v509_v11   ;;  %v556_v10 = vld [vmem:[%s6264_s2 + $0x188] sm:$0xff] }
  0x70   : >> { %603 = vperm.xlu2 %4401, %v513_v12  }
  0x73   : >> { %598 = vperm.xlu1 %4403, %v512_v13   ;;  %608 = vperm.xlu0 %4402, %v514_v14   ;;  %v558_v14 = vld [vmem:[%s6264_s2 + $0x198] sm:$0xff] }
  0x78   : >> { %618 = vperm.xlu2 %4401, %v516_v15   ;;  %v557_v15 = vld [vmem:[%s6264_s2 + $0x190] sm:$0xff] }
  0x7b   : >> { %613 = vperm.xlu1 %4403, %v515_v16   ;;  %623 = vperm.xlu0 %4402, %v517_v17   ;;  %v559_v16 = vld [vmem:[%s6264_s2 + $0x1a0] sm:$0xff] }
  0x7c   : >> { %v4139_v17 = vld [vmem:[%s6263_s1 + $0x40] sm:$0xff] }
  0x80   : >> { %633 = vperm.xlu2 %4401, %v519_v18  }
  0x83   : >> { %628 = vperm.xlu1 %4403, %v518_v19   ;;  %638 = vperm.xlu0 %4402, %v520_v20   ;;  %v4147_v19 = vld [vmem:[%s6263_s1 + $0x80] sm:$0xff] }
  0x84   : >> { %v4155_v20 = vld [vmem:[%s6263_s1 + $0xc0] sm:$0xff] }
  0x88   : >> { %648 = vperm.xlu2 %4401, %v522_v21  }
  0x8b   : >> { %643 = vperm.xlu1 %4403, %v521_v22   ;;  %653 = vperm.xlu0 %4402, %v523_v23   ;;  %v561_v22 = vld [vmem:[%s6264_s2 + $0x1b0] sm:$0xff] }
  0x90   : >> { %663 = vperm.xlu2 %4401, %v525_v24   ;;  %v562_v24 = vld [vmem:[%s6264_s2 + $0x1b8] sm:$0xff] }
  0x93   : >> { %658 = vperm.xlu1 %4403, %v524_v25   ;;  %668 = vperm.xlu0 %4402, %v526_v26   ;;  %v564_v26 = vld [vmem:[%s6264_s2 + $0x1c8] sm:$0xff] }
  0x98   : >> { %678 = vperm.xlu2 %4401, %v528_v27  }
  0x9b   : >> { %673 = vperm.xlu1 %4403, %v527_v28   ;;  %683 = vperm.xlu0 %4402, %v529_v29   ;;  %v563_v29 = vld [vmem:[%s6264_s2 + $0x1c0] sm:$0xff] }
  0xa0   : >> { %693 = vperm.xlu2 %4401, %v531_v30   ;;  %v565_v30 = vld [vmem:[%s6264_s2 + $0x1d0] sm:$0xff] }
  0xa3   : >> { %688 = vperm.xlu1 %4403, %v530_v31   ;;  %698 = vperm.xlu0 %4402, %v532_v32   ;;  %v4132_v31 = vld [vmem:[%s6263_s1 + $0x8] sm:$0xff] }
  0xa4   : >> { %v4140_v32 = vld [vmem:[%s6263_s1 + $0x48] sm:$0xff] }
  0xa8   : >> { %708 = vperm.xlu2 %4401, %v534_v33   ;;  %v4148_v33 = vld [vmem:[%s6263_s1 + $0x88] sm:$0xff] }
  0xab   : >> { %703 = vperm.xlu1 %4403, %v533_v34   ;;  %713 = vperm.xlu0 %4402, %v535_v35   ;;  %v4156_v34 = vld [vmem:[%s6263_s1 + $0xc8] sm:$0xff]  ;;  %v567_v35 = vld [vmem:[%s6264_s2 + $0x1e0] sm:$0xff] }
  0xb0   : >> { %723 = vperm.xlu2 %4401, %v537_v36  }
  0xb2   : >> { %v4843_v46 = vpop.permute.xlu2 %573 }
  0xb3   : >> { %718 = vperm.xlu1 %4403, %v536_v37   ;;  %728 = vperm.xlu0 %4402, %v538_v38   ;;  %v566_v38 = vld [vmem:[%s6264_s2 + $0x1d8] sm:$0xff] }
  0xb8   : >> { %738 = vperm.xlu2 %4401, %v540_v39   ;;  %v568_v39 = vld [vmem:[%s6264_s2 + $0x1e8] sm:$0xff] }
  0xba   : >> { %v4854_v52 = vpop.permute.xlu2 %578 }
  0xbb   : >> { %733 = vperm.xlu1 %4403, %v539_v40   ;;  %743 = vperm.xlu0 %4402, %v541_v41   ;;  %v570_v41 = vld [vmem:[%s6264_s2 + $0x1f8] sm:$0xff] }
  0xc0   : >> { %753 = vperm.xlu2 %4401, %v543_v42  }
  0xc2   : >> { %v4871_v0 = vpop.permute.xlu2 %593 }
  0xc3   : >> { %748 = vperm.xlu1 %4403, %v542_v43   ;;  %758 = vperm.xlu0 %4402, %v544_v44   ;;  %v569_v43 = vld [vmem:[%s6264_s2 + $0x1f0] sm:$0xff] }
  0xc4   : >> { %v4133_v44 = vld [vmem:[%s6263_s1 + $0x10] sm:$0xff] }
  0xc8   : >> { %768 = vperm.xlu2 %4401, %v546_v45   ;;  %v4141_v45 = vld [vmem:[%s6263_s1 + $0x50] sm:$0xff] }
  0xca   : >> { %v4886_v12 = vpop.permute.xlu2 %603 }
  0xcb   : >> { %763 = vperm.xlu1 %4403, %v545_v47   ;;  %773 = vperm.xlu0 %4402, %v547_v48   ;;  %v4149_v48 = vld [vmem:[%s6263_s1 + $0x90] sm:$0xff] }
  0xcd   : >> { %v4398_v50 = vpop.permute.xlu1 %4397  ;;  %v4393_v51 = vpop.permute.xlu0 %4392 }
  0xce   : >> { %v4400_v58 = vunpack.i.h.bf16 %v4398_v50  ;;  %v4399_v59 = vunpack.i.l.bf16 %v4398_v50  ;;  %v4395_v2 = vunpack.i.h.bf16 %v4393_v51  ;;  %v4394_v4 = vunpack.i.l.bf16 %v4393_v51 }
  0xd0   : >> { %783 = vperm.xlu2 %4401, %v549_v49   ;;  %v377_v1 = vpack.c.bf16 %v4400_v58, %v4399_v59  ;;  %v375_v13 = vpack.c.bf16 %v4394_v4, %v4728_v8  ;;  %v4131_v8 = vld [vmem:[%s6263_s1] sm:$0xff]  ;;  %v4157_v49 = vld [vmem:[%s6263_s1 + $0xd0] sm:$0xff]  ;;  %v4158_v58 = vld [vmem:[%s6263_s1 + $0xd8] sm:$0xff] }
  0xd1   : >> { %v4151_v4 = vld [vmem:[%s6263_s1 + $0xa0] sm:$0xff] }
  0xd2   : >> { %v4923_v23 = vpop.permute.xlu2 %618 }
  0xd3   : >> { %778 = vperm.xlu1 %4403, %v548_v53   ;;  %788 = vperm.xlu0 %4402, %v550_v54  }
  0xd5   : >> { %v370_v56 = vpop.permute.xlu1 %369  ;;  %v361_v60 = vpop.permute.xlu0 %360 }
  0xd6   : >> { %v378_v57 = vpack.c.bf16 %v370_v56, %v370_v56  ;;  %v376_v5 = vpack.c.bf16 %v361_v60, %v4395_v2  ;;  %v4142_v56 = vld [vmem:[%s6263_s1 + $0x58] sm:$0xff]  ;;  %v4143_v2 = vld [vmem:[%s6263_s1 + $0x60] sm:$0xff] }
  0xd8   : >> { %798 = vperm.xlu2 %4401, %v552_v55   ;;  %v1150_v61 = vsel %vm1148_vm1, %v378_v57, 0  ;;  %v4134_v55 = vld [vmem:[%s6263_s1 + $0x18] sm:$0xff] }
  0xd9   : >> { %1155 = vmatpush.bf16.msra.mxu0 %v1150_v61  ;;  %4323 = vmatpush.bf16.msra.mxu1 %v1150_v61  ;;  %v4150_v57 = vld [vmem:[%s6263_s1 + $0x98] sm:$0xff] }
  0xda   : >> { %4324 = vmatpush.bf16.msra.mxu2 %v1150_v61  ;;  %4325 = vmatpush.bf16.msra.mxu3 %v1150_v61  ;;  %v4940_v28 = vpop.permute.xlu2 %633 }
  0xdb   : >> { %793 = vperm.xlu1 %4403, %v551_v62   ;;  %803 = vperm.xlu0 %4402, %v553_v63  }
  0xdd   : >> { %1156 = vmatpush.bf16.msra.mxu0 %v377_v1  ;;  %4326 = vmatpush.bf16.msra.mxu1 %v377_v1  ;;  %v4876_v7 = vpop.permute.xlu1 %588  ;;  %v4884_v11 = vpop.permute.xlu0 %583 }
  0xde   : >> { %4327 = vmatpush.bf16.msra.mxu2 %v377_v1  ;;  %4328 = vmatpush.bf16.msra.mxu3 %v377_v1  ;;  %v4135_v1 = vld [vmem:[%s6263_s1 + $0x20] sm:$0xff] }
  0xe0   : >> { %813 = vperm.xlu2 %4401, %v555_v3  }
  0xe1   : >> { %1157 = vmatpush.bf16.msra.mxu0 %v376_v5  ;;  %4329 = vmatpush.bf16.msra.mxu1 %v376_v5 }
  0xe2   : >> { %4330 = vmatpush.bf16.msra.mxu2 %v376_v5  ;;  %4331 = vmatpush.bf16.msra.mxu3 %v376_v5  ;;  %v4977_v40 = vpop.permute.xlu2 %648  ;;  %v4159_v5 = vld [vmem:[%s6263_s1 + $0xe0] sm:$0xff] }
  0xe3   : >> { %808 = vperm.xlu1 %4403, %v554_v9   ;;  %818 = vperm.xlu0 %4402, %v556_v10  }
  0xe5   : >> { %1158 = vmatpush.bf16.msra.mxu0 %v375_v13  ;;  %4332 = vmatpush.bf16.msra.mxu1 %v375_v13  ;;  %v4904_v18 = vpop.permute.xlu1 %598  ;;  %v4916_v21 = vpop.permute.xlu0 %608 }
  0xe6   : >> { %4333 = vmatpush.bf16.msra.mxu2 %v375_v13  ;;  %4334 = vmatpush.bf16.msra.mxu3 %v375_v13 }
  0xe8   : >> { %828 = vperm.xlu2 %4401, %v558_v14   ;;  %v4136_v14 = vld [vmem:[%s6263_s1 + $0x28] sm:$0xff] }
  0xe9   : >> { %1159 = vmatpush.bf16.msra.mxu0 %v4723_v6  ;;  %4335 = vmatpush.bf16.msra.mxu1 %v4723_v6 }
  0xea   : >> { %4336 = vmatpush.bf16.msra.mxu2 %v4723_v6  ;;  %4337 = vmatpush.bf16.msra.mxu3 %v4723_v6  ;;  %v560_v6 = vld [vmem:[%s6264_s2 + $0x1a8] sm:$0xff]  ;;  %v5001_v50 = vpop.permute.xlu2 %663 }
  0xeb   : >> { %823 = vperm.xlu1 %4403, %v557_v15   ;;  %833 = vperm.xlu0 %4402, %v559_v16   ;;  %v4144_v15 = vld [vmem:[%s6263_s1 + $0x68] sm:$0xff] }
  0xec   : >> { %3388 = vmatmul.msk.bf16.vlgmr.msra.gmra.mxu0 %vm1051_vm2, %v4131_v8  ;;  %3396 = vmatmul.msk.bf16.vlgmr.msra.gmra.mxu1 %vm1051_vm2, %v4139_v17  ;;  %v4152_v8 = vld [vmem:[%s6263_s1 + $0xa8] sm:$0xff] }
  0xed   : >> { %3404 = vmatmul.msk.bf16.vlgmr.msra.gmra.mxu2 %vm1051_vm2, %v4147_v19  ;;  %3412 = vmatmul.msk.bf16.vlgmr.msra.gmra.mxu3 %vm1051_vm2, %v4155_v20  ;;  %v4933_v25 = vpop.permute.xlu1 %613  ;;  %v4938_v27 = vpop.permute.xlu0 %623  ;;  %v4160_v17 = vld [vmem:[%s6263_s1 + $0xe8] sm:$0xff] }
  0xf0   : >> { %843 = vperm.xlu2 %4401, %v561_v22  }
  0xf2   : >> { %v5011_v54 = vpop.permute.xlu2 %678 }
  0xf3   : >> { %838 = vperm.xlu1 %4403, %v560_v6   ;;  %848 = vperm.xlu0 %4402, %v562_v24  }
  0xf5   : >> { %v4965_v36 = vpop.permute.xlu1 %628  ;;  %v4969_v37 = vpop.permute.xlu0 %638 }
  0xf8   : >> { %858 = vperm.xlu2 %4401, %v564_v26   ;;  %v4137_v26 = vld [vmem:[%s6263_s1 + $0x30] sm:$0xff] }
  0xfa   : >> { %v5033_v61 = vpop.permute.xlu2 %693 }
  0xfb   : >> { %853 = vperm.xlu1 %4403, %v563_v29   ;;  %863 = vperm.xlu0 %4402, %v565_v30   ;;  %v4145_v29 = vld [vmem:[%s6263_s1 + $0x70] sm:$0xff] }
  0xfc   : >> { %3389 = vmatmul.msk.bf16.gmra.mxu0 %vm1051_vm2, %v4132_v31  ;;  %3397 = vmatmul.msk.bf16.gmra.mxu1 %vm1051_vm2, %v4140_v32  ;;  %v4153_v30 = vld [vmem:[%s6263_s1 + $0xb0] sm:$0xff] }
  0xfd   : >> { %3405 = vmatmul.msk.bf16.gmra.mxu2 %vm1051_vm2, %v4148_v33  ;;  %3413 = vmatmul.msk.bf16.gmra.mxu3 %vm1051_vm2, %v4156_v34  ;;  %v4982_v42 = vpop.permute.xlu1 %643  ;;  %v4993_v47 = vpop.permute.xlu0 %653  ;;  %v4161_v31 = vld [vmem:[%s6263_s1 + $0xf0] sm:$0xff] }
 0x100   : >> { %873 = vperm.xlu2 %4401, %v567_v35  }
 0x102   : >> { %v5045_v3 = vpop.permute.xlu2 %708 }
 0x103   : >> { %868 = vperm.xlu1 %4403, %v566_v38   ;;  %878 = vperm.xlu0 %4402, %v568_v39   ;;  %v4138_v38 = vld [vmem:[%s6263_s1 + $0x38] sm:$0xff] }
 0x104   : >> { %v4146_v39 = vld [vmem:[%s6263_s1 + $0x78] sm:$0xff] }
 0x105   : >> { %v5007_v51 = vpop.permute.xlu1 %658  ;;  %v5009_v53 = vpop.permute.xlu0 %668 }
 0x108   : >> { %888 = vperm.xlu2 %4401, %v570_v41  }
 0x10a   : >> { %v5061_v13 = vpop.permute.xlu2 %723 }
 0x10b   : >> { %883 = vperm.xlu1 %4403, %v569_v43   ;;  %v4154_v43 = vld [vmem:[%s6263_s1 + $0xb8] sm:$0xff] }
 0x10c   : >> { %3390 = vmatmul.msk.bf16.gmra.mxu0 %vm1051_vm2, %v4133_v44  ;;  %3398 = vmatmul.msk.bf16.gmra.mxu1 %vm1051_vm2, %v4141_v45  ;;  %v4162_v44 = vld [vmem:[%s6263_s1 + $0xf8] sm:$0xff] }
 0x10d   : >> { %3406 = vmatmul.msk.bf16.gmra.mxu2 %vm1051_vm2, %v4149_v48  ;;  %3414 = vmatmul.msk.bf16.gmra.mxu3 %vm1051_vm2, %v4157_v49  ;;  %v5025_v59 = vpop.permute.xlu1 %673  ;;  %v5029_v60 = vpop.permute.xlu0 %683 }
 0x112   : >> { %v5081_v20 = vpop.permute.xlu2 %738 }
 0x115   : >> { %v5035_v62 = vpop.permute.xlu1 %688  ;;  %v5037_v63 = vpop.permute.xlu0 %698 }
 0x11a   : >> { %v5087_v24 = vpop.permute.xlu2 %753 }
 0x11c   : >> { %3391 = vmatmul.msk.bf16.gmra.mxu0 %vm1051_vm2, %v4134_v55  ;;  %3399 = vmatmul.msk.bf16.gmra.mxu1 %vm1051_vm2, %v4142_v56 }
 0x11d   : >> { %3407 = vmatmul.msk.bf16.gmra.mxu2 %vm1051_vm2, %v4150_v57  ;;  %3415 = vmatmul.msk.bf16.gmra.mxu3 %vm1051_vm2, %v4158_v58  ;;  %v5057_v9 = vpop.permute.xlu1 %703  ;;  %v5059_v10 = vpop.permute.xlu0 %713 }
 0x122   : >> { %v5109_v34 = vpop.permute.xlu2 %768 }
 0x125   : >> { %v5069_v16 = vpop.permute.xlu1 %718  ;;  %v5077_v19 = vpop.permute.xlu0 %728 }
 0x126   : >> { %6275 = vst [vmem:[#allocation6_spill] sm:$0xff] %v5077_v19 }
 0x12a   : >> { %v5127_v45 = vpop.permute.xlu2 %783 }
 0x12c   : >> { %3392 = vmatmul.msk.bf16.gmra.mxu0 %vm1051_vm2, %v4135_v1  ;;  %3400 = vmatmul.msk.bf16.gmra.mxu1 %vm1051_vm2, %v4143_v2 }
 0x12d   : >> { %3408 = vmatmul.msk.bf16.gmra.mxu2 %vm1051_vm2, %v4151_v4  ;;  %3416 = vmatmul.msk.bf16.gmra.mxu3 %vm1051_vm2, %v4159_v5  ;;  %v734_v22 = vpop.permute.xlu1 %733  ;;  %v5085_v6 = vpop.permute.xlu0 %743  ;;  %v443_v4 = vld [vmem:[#allocation2] sm:$0xff] }
 0x12e   : >> { %v459_v5 = vld [vmem:[#allocation2 + $0x80] sm:$0xff] }
 0x132   : >> { %v5137_v55 = vpop.permute.xlu2 %798 }
 0x135   : >> { %v5103_v32 = vpop.permute.xlu1 %748  ;;  %v5107_v33 = vpop.permute.xlu0 %758 }
 0x13c   : >> { %3393 = vmatmul.msk.bf16.gmra.mxu0 %vm1051_vm2, %v4136_v14  ;;  %3401 = vmatmul.msk.bf16.gmra.mxu1 %vm1051_vm2, %v4144_v15 }
 0x13d   : >> { %3409 = vmatmul.msk.bf16.gmra.mxu2 %vm1051_vm2, %v4152_v8  ;;  %3417 = vmatmul.msk.bf16.gmra.mxu3 %vm1051_vm2, %v4160_v17  ;;  %v5111_v35 = vpop.permute.xlu1 %763  ;;  %v5119_v41 = vpop.permute.xlu0 %773 }
 0x145   : >> { %v5133_v48 = vpop.permute.xlu1 %778  ;;  %v5135_v49 = vpop.permute.xlu0 %788 }
 0x14c   : >> { %3394 = vmatmul.msk.bf16.gmra.mxu0 %vm1051_vm2, %v4137_v26  ;;  %3402 = vmatmul.msk.bf16.gmra.mxu1 %vm1051_vm2, %v4145_v29  ;;  %v814_v29 = vpop.permute.xlu2 %813 }
 0x14d   : >> { %3410 = vmatmul.msk.bf16.gmra.mxu2 %vm1051_vm2, %v4153_v30  ;;  %3418 = vmatmul.msk.bf16.gmra.mxu3 %vm1051_vm2, %v4161_v31  ;;  %v5141_v2 = vpop.permute.xlu1 %793  ;;  %v5143_v8 = vpop.permute.xlu0 %803 }
 0x15c   : >> { %3395 = vmatmul.msk.bf16.gmra.mxu0 %vm1051_vm2, %v4138_v38  ;;  %3403 = vmatmul.msk.bf16.gmra.mxu1 %vm1051_vm2, %v4146_v39 }
 0x15d   : >> { %3411 = vmatmul.msk.bf16.gmra.mxu2 %vm1051_vm2, %v4154_v43  ;;  %3419 = vmatmul.msk.bf16.gmra.mxu3 %vm1051_vm2, %v4162_v44  ;;  %v475_v43 = vld [vmem:[#allocation2 + $0x100] sm:$0xff] }
 0x15e   : >> { %v491_v44 = vld [vmem:[#allocation2 + $0x180] sm:$0xff] }
 0x169   : >> { %v1161_v56 = vpop.f32.mrf.mxu0  ;;  %v1201_v57 = vpop.f32.mrf.mxu1 }
 0x16a   : >> { %v1162_v58 = vadd.f32 %v1161_v56, %v4843_v46  ;;  %v1202_v1 = vadd.f32 %v1201_v57, %v4993_v47 }
 0x16c   : >> { %v1321_v14 = vmax.f32 %v1162_v58, 0.0  ;;  %v1337_v15 = vmax.f32 %v1202_v1, 0.0 }
 0x16e   : >> { %v1385_v17 = vadd.f32 %v1321_v14, %v443_v4  ;;  %v1401_v26 = vadd.f32 %v1337_v15, %v459_v5  ;;  %v444_v4 = vld [vmem:[#allocation2 + $0x8] sm:$0xff] }
 0x16f   : >> { %v460_v5 = vld [vmem:[#allocation2 + $0x88] sm:$0xff] }
 0x170   : >> { %1449 = vst.msk [vmem:[#allocation2] sm:$0xff] %vm277_vm0, %v1385_v17  ;;  %v1241_v30 = vpop.f32.mrf.mxu2  ;;  %v1281_v31 = vpop.f32.mrf.mxu3 }
 0x171   : >> { %1465 = vst.msk [vmem:[#allocation2 + $0x80] sm:$0xff] %vm277_vm0, %v1401_v26  ;;  %v1242_v46 = vadd.f32 %v1241_v30, %v734_v22  ;;  %v1282_v38 = vadd.f32 %v1281_v31, %v814_v29  ;;  %v1163_v47 = vpop.f32.mrf.mxu0  ;;  %v1203_v39 = vpop.f32.mrf.mxu1 }
 0x172   : >> { %v1164_v56 = vadd.f32 %v1163_v47, %v4854_v52  ;;  %v1204_v57 = vadd.f32 %v1203_v39, %v5007_v51  ;;  %v5149_v17 = vpop.permute.xlu1 %808  ;;  %v819_v30 = vpop.permute.xlu0 %818  ;;  %v476_v39 = vld [vmem:[#allocation2 + $0x108] sm:$0xff] }
 0x173   : >> { %v1353_v58 = vmax.f32 %v1242_v46, 0.0  ;;  %v1369_v1 = vmax.f32 %v1282_v38, 0.0 }
 0x174   : >> { %v1322_v14 = vmax.f32 %v1164_v56, 0.0  ;;  %v1338_v15 = vmax.f32 %v1204_v57, 0.0 }
 0x175   : >> { %v1417_v19 = vadd.f32 %v1353_v58, %v475_v43  ;;  %v1433_v26 = vadd.f32 %v1369_v1, %v491_v44  ;;  %v492_v43 = vld [vmem:[#allocation2 + $0x188] sm:$0xff]  ;;  %v445_v58 = vld [vmem:[#allocation2 + $0x10] sm:$0xff] }
 0x176   : >> { %v1386_v22 = vadd.f32 %v1322_v14, %v444_v4  ;;  %v1402_v29 = vadd.f32 %v1338_v15, %v460_v5  ;;  %v461_v1 = vld [vmem:[#allocation2 + $0x90] sm:$0xff] }
 0x177   : >> { %1481 = vst.msk [vmem:[#allocation2 + $0x100] sm:$0xff] %vm277_vm0, %v1417_v19 }
 0x178   : >> { %1497 = vst.msk [vmem:[#allocation2 + $0x180] sm:$0xff] %vm277_vm0, %v1433_v26  ;;  %v1243_v52 = vpop.f32.mrf.mxu2  ;;  %v1283_v31 = vpop.f32.mrf.mxu3 }
 0x179   : >> { %1450 = vst.msk [vmem:[#allocation2 + $0x8] sm:$0xff] %vm277_vm0, %v1386_v22  ;;  %v1244_v51 = vadd.f32 %v1243_v52, %v5081_v20  ;;  %v1284_v46 = vadd.f32 %v1283_v31, %v819_v30  ;;  %v1166_v38 = vpop.f32.mrf.mxu0  ;;  %v1206_v47 = vpop.f32.mrf.mxu1 }
 0x17a   : >> { %1466 = vst.msk [vmem:[#allocation2 + $0x88] sm:$0xff] %vm277_vm0, %v1402_v29  ;;  %v1167_v44 = vadd.f32 %v1166_v38, %v4884_v11  ;;  %v1207_v56 = vadd.f32 %v1206_v47, %v5001_v50  ;;  %v824_v22 = vpop.permute.xlu1 %823 }
 0x17b   : >> { %v1354_v19 = vmax.f32 %v1244_v51, 0.0  ;;  %v1370_v57 = vmax.f32 %v1284_v46, 0.0  ;;  %v477_v51 = vld [vmem:[#allocation2 + $0x110] sm:$0xff] }
 0x17c   : >> { %v1323_v4 = vmax.f32 %v1167_v44, 0.0  ;;  %v1339_v5 = vmax.f32 %v1207_v56, 0.0  ;;  %v493_v46 = vld [vmem:[#allocation2 + $0x190] sm:$0xff]  ;;  %v446_v44 = vld [vmem:[#allocation2 + $0x18] sm:$0xff] }
 0x17d   : >> { %v1418_v14 = vadd.f32 %v1354_v19, %v476_v39  ;;  %v1434_v15 = vadd.f32 %v1370_v57, %v492_v43  ;;  %v462_v56 = vld [vmem:[#allocation2 + $0x98] sm:$0xff] }
 0x17e   : >> { %v1387_v20 = vadd.f32 %v1323_v4, %v445_v58  ;;  %v1403_v26 = vadd.f32 %v1339_v5, %v461_v1  ;;  %v829_v5 = vpop.permute.xlu2 %828 }
 0x17f   : >> { %1482 = vst.msk [vmem:[#allocation2 + $0x108] sm:$0xff] %vm277_vm0, %v1418_v14 }
 0x180   : >> { %1498 = vst.msk [vmem:[#allocation2 + $0x188] sm:$0xff] %vm277_vm0, %v1434_v15  ;;  %v1246_v29 = vpop.f32.mrf.mxu2  ;;  %v1286_v30 = vpop.f32.mrf.mxu3 }
 0x181   : >> { %1451 = vst.msk [vmem:[#allocation2 + $0x10] sm:$0xff] %vm277_vm0, %v1387_v20  ;;  %v1247_v11 = vadd.f32 %v1246_v29, %v5085_v6  ;;  %v1287_v50 = vadd.f32 %v1286_v30, %v824_v22  ;;  %v1168_v52 = vpop.f32.mrf.mxu0  ;;  %v1208_v31 = vpop.f32.mrf.mxu1  ;;  %v478_v22 = vld [vmem:[#allocation2 + $0x118] sm:$0xff] }
 0x182   : >> { %1467 = vst.msk [vmem:[#allocation2 + $0x90] sm:$0xff] %vm277_vm0, %v1403_v26  ;;  %v1169_v38 = vadd.f32 %v1168_v52, %v4876_v7  ;;  %v1209_v47 = vadd.f32 %v1208_v31, %v5009_v53  ;;  %v494_v29 = vld [vmem:[#allocation2 + $0x198] sm:$0xff]  ;;  %v447_v31 = vld [vmem:[#allocation2 + $0x20] sm:$0xff] }
 0x183   : >> { %v1355_v39 = vmax.f32 %v1247_v11, 0.0  ;;  %v1371_v43 = vmax.f32 %v1287_v50, 0.0 }
 0x184   : >> { %v1324_v19 = vmax.f32 %v1169_v38, 0.0  ;;  %v1340_v57 = vmax.f32 %v1209_v47, 0.0 }
 0x185   : >> { %v1419_v58 = vadd.f32 %v1355_v39, %v477_v51  ;;  %v1435_v1 = vadd.f32 %v1371_v43, %v493_v46  ;;  %v463_v51 = vld [vmem:[#allocation2 + $0xa0] sm:$0xff] }
 0x186   : >> { %v1388_v6 = vadd.f32 %v1324_v19, %v446_v44  ;;  %v1404_v4 = vadd.f32 %v1340_v57, %v462_v56  ;;  %v834_v44 = vpop.permute.xlu0 %833 }
 0x187   : >> { %1483 = vst.msk [vmem:[#allocation2 + $0x110] sm:$0xff] %vm277_vm0, %v1419_v58 }
 0x188   : >> { %1499 = vst.msk [vmem:[#allocation2 + $0x190] sm:$0xff] %vm277_vm0, %v1435_v1  ;;  %v1248_v14 = vpop.f32.mrf.mxu2  ;;  %v1288_v15 = vpop.f32.mrf.mxu3  ;;  %v479_v1 = vld [vmem:[#allocation2 + $0x120] sm:$0xff] }
 0x189   : >> { %1452 = vst.msk [vmem:[#allocation2 + $0x18] sm:$0xff] %vm277_vm0, %v1388_v6  ;;  %v1249_v7 = vadd.f32 %v1248_v14, %v5103_v32  ;;  %v1289_v53 = vadd.f32 %v1288_v15, %v829_v5  ;;  %v1171_v20 = vpop.f32.mrf.mxu0  ;;  %v1211_v26 = vpop.f32.mrf.mxu1  ;;  %v495_v6 = vld [vmem:[#allocation2 + $0x1a0] sm:$0xff] }
 0x18a   : >> { %1468 = vst.msk [vmem:[#allocation2 + $0x98] sm:$0xff] %vm277_vm0, %v1404_v4  ;;  %v1172_v30 = vadd.f32 %v1171_v20, %v4871_v0  ;;  %v1212_v11 = vadd.f32 %v1211_v26, %v5025_v59 }
 0x18b   : >> { %v1356_v50 = vmax.f32 %v1249_v7, 0.0  ;;  %v1372_v52 = vmax.f32 %v1289_v53, 0.0  ;;  %v448_v7 = vld [vmem:[#allocation2 + $0x28] sm:$0xff] }
 0x18c   : >> { %v1325_v46 = vmax.f32 %v1172_v30, 0.0  ;;  %v1341_v38 = vmax.f32 %v1212_v11, 0.0  ;;  %v464_v53 = vld [vmem:[#allocation2 + $0xa8] sm:$0xff]  ;;  %v839_v11 = vpop.permute.xlu1 %838 }
 0x18d   : >> { %v1420_v47 = vadd.f32 %v1356_v50, %v478_v22  ;;  %v1436_v39 = vadd.f32 %v1372_v52, %v494_v29 }
 0x18e   : >> { %v1389_v32 = vadd.f32 %v1325_v46, %v447_v31  ;;  %v1405_v43 = vadd.f32 %v1341_v38, %v463_v51  ;;  %v480_v46 = vld [vmem:[#allocation2 + $0x128] sm:$0xff] }
 0x18f   : >> { %1484 = vst.msk [vmem:[#allocation2 + $0x118] sm:$0xff] %vm277_vm0, %v1420_v47  ;;  %v496_v38 = vld [vmem:[#allocation2 + $0x1a8] sm:$0xff] }
 0x190   : >> { %1500 = vst.msk [vmem:[#allocation2 + $0x198] sm:$0xff] %vm277_vm0, %v1436_v39  ;;  %v1251_v56 = vpop.f32.mrf.mxu2  ;;  %v1291_v19 = vpop.f32.mrf.mxu3 }
 0x191   : >> { %1453 = vst.msk [vmem:[#allocation2 + $0x20] sm:$0xff] %vm277_vm0, %v1389_v32  ;;  %v1252_v0 = vadd.f32 %v1251_v56, %v5087_v24  ;;  %v1292_v59 = vadd.f32 %v1291_v19, %v834_v44  ;;  %v1173_v57 = vpop.f32.mrf.mxu0  ;;  %v1213_v58 = vpop.f32.mrf.mxu1  ;;  %v449_v44 = vld [vmem:[#allocation2 + $0x30] sm:$0xff] }
 0x192   : >> { %1469 = vst.msk [vmem:[#allocation2 + $0xa0] sm:$0xff] %vm277_vm0, %v1405_v43  ;;  %v1174_v4 = vadd.f32 %v1173_v57, %v4904_v18  ;;  %v1214_v5 = vadd.f32 %v1213_v58, %v5011_v54  ;;  %v465_v56 = vld [vmem:[#allocation2 + $0xb0] sm:$0xff] }
 0x193   : >> { %v1357_v14 = vmax.f32 %v1252_v0, 0.0  ;;  %v1373_v15 = vmax.f32 %v1292_v59, 0.0 }
 0x194   : >> { %v1326_v20 = vmax.f32 %v1174_v4, 0.0  ;;  %v1342_v26 = vmax.f32 %v1214_v5, 0.0 }
 0x195   : >> { %v1421_v22 = vadd.f32 %v1357_v14, %v479_v1  ;;  %v1437_v29 = vadd.f32 %v1373_v15, %v495_v6  ;;  %v844_v1 = vpop.permute.xlu2 %843  ;;  %v481_v15 = vld [vmem:[#allocation2 + $0x130] sm:$0xff] }
 0x196   : >> { %v1390_v24 = vadd.f32 %v1326_v20, %v448_v7  ;;  %v1406_v30 = vadd.f32 %v1342_v26, %v464_v53  ;;  %v497_v7 = vld [vmem:[#allocation2 + $0x1b0] sm:$0xff] }
 0x197   : >> { %1485 = vst.msk [vmem:[#allocation2 + $0x120] sm:$0xff] %vm277_vm0, %v1421_v22 }
 0x198   : >> { %1501 = vst.msk [vmem:[#allocation2 + $0x1a0] sm:$0xff] %vm277_vm0, %v1437_v29  ;;  %v1253_v50 = vpop.f32.mrf.mxu2  ;;  %v1293_v52 = vpop.f32.mrf.mxu3  ;;  %v450_v29 = vld [vmem:[#allocation2 + $0x38] sm:$0xff] }
 0x199   : >> { %1454 = vst.msk [vmem:[#allocation2 + $0x28] sm:$0xff] %vm277_vm0, %v1390_v24  ;;  %v1254_v18 = vadd.f32 %v1253_v50, %v5107_v33  ;;  %v1294_v54 = vadd.f32 %v1293_v52, %v839_v11  ;;  %v1176_v31 = vpop.f32.mrf.mxu0  ;;  %v1216_v51 = vpop.f32.mrf.mxu1  ;;  %v466_v24 = vld [vmem:[#allocation2 + $0xb8] sm:$0xff] }
 0x19a   : >> { %1470 = vst.msk [vmem:[#allocation2 + $0xa8] sm:$0xff] %vm277_vm0, %v1406_v30  ;;  %v1177_v47 = vadd.f32 %v1176_v31, %v4886_v12  ;;  %v1217_v39 = vadd.f32 %v1216_v51, %v5029_v60 }
 0x19b   : >> { %v1358_v32 = vmax.f32 %v1254_v18, 0.0  ;;  %v1374_v43 = vmax.f32 %v1294_v54, 0.0  ;;  %v849_v54 = vpop.permute.xlu0 %848 }
 0x19c   : >> { %v1327_v19 = vmax.f32 %v1177_v47, 0.0  ;;  %v1343_v0 = vmax.f32 %v1217_v39, 0.0  ;;  %v482_v47 = vld [vmem:[#allocation2 + $0x138] sm:$0xff] }
 0x19d   : >> { %v1422_v59 = vadd.f32 %v1358_v32, %v480_v46  ;;  %v1438_v57 = vadd.f32 %v1374_v43, %v496_v38  ;;  %v498_v39 = vld [vmem:[#allocation2 + $0x1b8] sm:$0xff] }
 0x19e   : >> { %v1391_v33 = vadd.f32 %v1327_v19, %v449_v44  ;;  %v1407_v58 = vadd.f32 %v1343_v0, %v465_v56  ;;  %v451_v19 = vld [vmem:[#allocation2 + $0x40] sm:$0xff] }
 0x19f   : >> { %1486 = vst.msk [vmem:[#allocation2 + $0x128] sm:$0xff] %vm277_vm0, %v1422_v59  ;;  %v467_v0 = vld [vmem:[#allocation2 + $0xc0] sm:$0xff] }
 0x1a0   : >> { %1502 = vst.msk [vmem:[#allocation2 + $0x1a8] sm:$0xff] %vm277_vm0, %v1438_v57  ;;  %v1256_v6 = vpop.f32.mrf.mxu2  ;;  %v1296_v4 = vpop.f32.mrf.mxu3 }
 0x1a1   : >> { %1455 = vst.msk [vmem:[#allocation2 + $0x30] sm:$0xff] %vm277_vm0, %v1391_v33  ;;  %v1257_v12 = vadd.f32 %v1256_v6, %v5111_v35  ;;  %v1297_v60 = vadd.f32 %v1296_v4, %v844_v1  ;;  %v1178_v5 = vpop.f32.mrf.mxu0  ;;  %v1218_v14 = vpop.f32.mrf.mxu1 }
 0x1a2   : >> { %1471 = vst.msk [vmem:[#allocation2 + $0xb0] sm:$0xff] %vm277_vm0, %v1407_v58  ;;  %v1179_v53 = vadd.f32 %v1178_v5, %v4916_v21  ;;  %v1219_v20 = vadd.f32 %v1218_v14, %v5035_v62  ;;  %v854_v6 = vpop.permute.xlu1 %853  ;;  %v483_v14 = vld [vmem:[#allocation2 + $0x140] sm:$0xff] }
 0x1a3   : >> { %v1359_v26 = vmax.f32 %v1257_v12, 0.0  ;;  %v1375_v22 = vmax.f32 %v1297_v60, 0.0 }
 0x1a4   : >> { %v1328_v30 = vmax.f32 %v1179_v53, 0.0  ;;  %v1344_v11 = vmax.f32 %v1219_v20, 0.0 }
 0x1a5   : >> { %v1423_v50 = vadd.f32 %v1359_v26, %v481_v15  ;;  %v1439_v52 = vadd.f32 %v1375_v22, %v497_v7  ;;  %v499_v15 = vld [vmem:[#allocation2 + $0x1c0] sm:$0xff]  ;;  %v452_v22 = vld [vmem:[#allocation2 + $0x48] sm:$0xff] }
 0x1a6   : >> { %v1392_v35 = vadd.f32 %v1328_v30, %v450_v29  ;;  %v1408_v18 = vadd.f32 %v1344_v11, %v466_v24  ;;  %v468_v29 = vld [vmem:[#allocation2 + $0xc8] sm:$0xff] }
 0x1a7   : >> { %1487 = vst.msk [vmem:[#allocation2 + $0x130] sm:$0xff] %vm277_vm0, %v1423_v50 }
 0x1a8   : >> { %1503 = vst.msk [vmem:[#allocation2 + $0x1b0] sm:$0xff] %vm277_vm0, %v1439_v52  ;;  %v1258_v31 = vpop.f32.mrf.mxu2  ;;  %v1298_v51 = vpop.f32.mrf.mxu3 }
 0x1a9   : >> { %1456 = vst.msk [vmem:[#allocation2 + $0x38] sm:$0xff] %vm277_vm0, %v1392_v35  ;;  %v1259_v21 = vadd.f32 %v1258_v31, %v5109_v34  ;;  %v1299_v62 = vadd.f32 %v1298_v51, %v849_v54  ;;  %v1181_v46 = vpop.f32.mrf.mxu0  ;;  %v1221_v38 = vpop.f32.mrf.mxu1 }
 0x1aa   : >> { %1472 = vst.msk [vmem:[#allocation2 + $0xb8] sm:$0xff] %vm277_vm0, %v1408_v18  ;;  %v1182_v32 = vadd.f32 %v1181_v46, %v4933_v25  ;;  %v1222_v43 = vadd.f32 %v1221_v38, %v5033_v61  ;;  %v859_v35 = vpop.permute.xlu2 %858 }
 0x1ab   : >> { %v1360_v44 = vmax.f32 %v1259_v21, 0.0  ;;  %v1376_v56 = vmax.f32 %v1299_v62, 0.0  ;;  %v484_v21 = vld [vmem:[#allocation2 + $0x148] sm:$0xff] }
 0x1ac   : >> { %v1329_v59 = vmax.f32 %v1182_v32, 0.0  ;;  %v1345_v57 = vmax.f32 %v1222_v43, 0.0  ;;  %v500_v62 = vld [vmem:[#allocation2 + $0x1c8] sm:$0xff]  ;;  %v453_v32 = vld [vmem:[#allocation2 + $0x50] sm:$0xff] }
 0x1ad   : >> { %v1424_v33 = vadd.f32 %v1360_v44, %v482_v47  ;;  %v1440_v58 = vadd.f32 %v1376_v56, %v498_v39  ;;  %v469_v43 = vld [vmem:[#allocation2 + $0xd0] sm:$0xff] }
 0x1ae   : >> { %v1393_v34 = vadd.f32 %v1329_v59, %v451_v19  ;;  %v1409_v1 = vadd.f32 %v1345_v57, %v467_v0  ;;  %v864_v57 = vpop.permute.xlu0 %863 }
 0x1af   : >> { %1488 = vst.msk [vmem:[#allocation2 + $0x138] sm:$0xff] %vm277_vm0, %v1424_v33 }
 0x1b0   : >> { %1504 = vst.msk [vmem:[#allocation2 + $0x1b8] sm:$0xff] %vm277_vm0, %v1440_v58  ;;  %v1261_v4 = vpop.f32.mrf.mxu2  ;;  %v1301_v12 = vpop.f32.mrf.mxu3 }
 0x1b1   : >> { %1457 = vst.msk [vmem:[#allocation2 + $0x40] sm:$0xff] %vm277_vm0, %v1393_v34  ;;  %v1262_v25 = vadd.f32 %v1261_v4, %v5119_v41  ;;  %v1302_v61 = vadd.f32 %v1301_v12, %v854_v6  ;;  %v1183_v60 = vpop.f32.mrf.mxu0  ;;  %v1223_v5 = vpop.f32.mrf.mxu1  ;;  %v485_v6 = vld [vmem:[#allocation2 + $0x150] sm:$0xff] }
 0x1b2   : >> { %1473 = vst.msk [vmem:[#allocation2 + $0xc0] sm:$0xff] %vm277_vm0, %v1409_v1  ;;  %v1184_v7 = vadd.f32 %v1183_v60, %v4923_v23  ;;  %v1224_v53 = vadd.f32 %v1223_v5, %v5037_v63  ;;  %v501_v4 = vld [vmem:[#allocation2 + $0x1d0] sm:$0xff]  ;;  %v454_v5 = vld [vmem:[#allocation2 + $0x58] sm:$0xff] }
 0x1b3   : >> { %v1361_v20 = vmax.f32 %v1262_v25, 0.0  ;;  %v1377_v26 = vmax.f32 %v1302_v61, 0.0 }
 0x1b4   : >> { %v1330_v24 = vmax.f32 %v1184_v7, 0.0  ;;  %v1346_v30 = vmax.f32 %v1224_v53, 0.0 }
 0x1b5   : >> { %v1425_v11 = vadd.f32 %v1361_v20, %v483_v14  ;;  %v1441_v50 = vadd.f32 %v1377_v26, %v499_v15  ;;  %v470_v14 = vld [vmem:[#allocation2 + $0xd8] sm:$0xff] }
 0x1b6   : >> { %v1394_v41 = vadd.f32 %v1330_v24, %v452_v22  ;;  %v1410_v52 = vadd.f32 %v1346_v30, %v468_v29  ;;  %v869_v22 = vpop.permute.xlu1 %868 }
 0x1b7   : >> { %1489 = vst.msk [vmem:[#allocation2 + $0x140] sm:$0xff] %vm277_vm0, %v1425_v11 }
 0x1b8   : >> { %1505 = vst.msk [vmem:[#allocation2 + $0x1c0] sm:$0xff] %vm277_vm0, %v1441_v50  ;;  %v1263_v18 = vpop.f32.mrf.mxu2  ;;  %v1303_v54 = vpop.f32.mrf.mxu3  ;;  %v486_v50 = vld [vmem:[#allocation2 + $0x158] sm:$0xff] }
 0x1b9   : >> { %1458 = vst.msk [vmem:[#allocation2 + $0x48] sm:$0xff] %vm277_vm0, %v1394_v41  ;;  %v1264_v23 = vadd.f32 %v1263_v18, %v5133_v48  ;;  %v1304_v63 = vadd.f32 %v1303_v54, %v859_v35  ;;  %v1186_v31 = vpop.f32.mrf.mxu0  ;;  %v1226_v51 = vpop.f32.mrf.mxu1  ;;  %v502_v41 = vld [vmem:[#allocation2 + $0x1d8] sm:$0xff] }
 0x1ba   : >> { %1474 = vst.msk [vmem:[#allocation2 + $0xc8] sm:$0xff] %vm277_vm0, %v1410_v52  ;;  %v1187_v46 = vadd.f32 %v1186_v31, %v4938_v27  ;;  %v1227_v38 = vadd.f32 %v1226_v51, %v5057_v9 }
 0x1bb   : >> { %v1362_v47 = vmax.f32 %v1264_v23, 0.0  ;;  %v1378_v39 = vmax.f32 %v1304_v63, 0.0  ;;  %v455_v23 = vld [vmem:[#allocation2 + $0x60] sm:$0xff] }
 0x1bc   : >> { %v1331_v44 = vmax.f32 %v1187_v46, 0.0  ;;  %v1347_v56 = vmax.f32 %v1227_v38, 0.0  ;;  %v471_v63 = vld [vmem:[#allocation2 + $0xe0] sm:$0xff]  ;;  %v874_v38 = vpop.permute.xlu2 %873 }
 0x1bd   : >> { %v1426_v19 = vadd.f32 %v1362_v47, %v484_v21  ;;  %v1442_v0 = vadd.f32 %v1378_v39, %v500_v62 }
 0x1be   : >> { %v1395_v48 = vadd.f32 %v1331_v44, %v453_v32  ;;  %v1411_v59 = vadd.f32 %v1347_v56, %v469_v43  ;;  %v487_v44 = vld [vmem:[#allocation2 + $0x160] sm:$0xff] }
 0x1bf   : >> { %1490 = vst.msk [vmem:[#allocation2 + $0x148] sm:$0xff] %vm277_vm0, %v1426_v19  ;;  %v503_v56 = vld [vmem:[#allocation2 + $0x1e0] sm:$0xff] }
 0x1c0   : >> { %1506 = vst.msk [vmem:[#allocation2 + $0x1c8] sm:$0xff] %vm277_vm0, %v1442_v0  ;;  %v1266_v33 = vpop.f32.mrf.mxu2  ;;  %v1306_v58 = vpop.f32.mrf.mxu3 }
 0x1c1   : >> { %1459 = vst.msk [vmem:[#allocation2 + $0x50] sm:$0xff] %vm277_vm0, %v1395_v48  ;;  %v1267_v27 = vadd.f32 %v1266_v33, %v5127_v45  ;;  %v1307_v9 = vadd.f32 %v1306_v58, %v864_v57  ;;  %v1188_v34 = vpop.f32.mrf.mxu0  ;;  %v1228_v1 = vpop.f32.mrf.mxu1  ;;  %v456_v57 = vld [vmem:[#allocation2 + $0x68] sm:$0xff] }
 0x1c2   : >> { %1475 = vst.msk [vmem:[#allocation2 + $0xd0] sm:$0xff] %vm277_vm0, %v1411_v59  ;;  %v1189_v12 = vadd.f32 %v1188_v34, %v4965_v36  ;;  %v1229_v25 = vadd.f32 %v1228_v1, %v5045_v3  ;;  %v472_v33 = vld [vmem:[#allocation2 + $0xe8] sm:$0xff] }
 0x1c3   : >> { %v1363_v61 = vmax.f32 %v1267_v27, 0.0  ;;  %v1379_v60 = vmax.f32 %v1307_v9, 0.0 }
 0x1c4   : >> { %v1332_v15 = vmax.f32 %v1189_v12, 0.0  ;;  %v1348_v7 = vmax.f32 %v1229_v25, 0.0 }
 0x1c5   : >> { %v1427_v53 = vadd.f32 %v1363_v61, %v485_v6  ;;  %v1443_v20 = vadd.f32 %v1379_v60, %v501_v4  ;;  %v879_v6 = vpop.permute.xlu0 %878  ;;  %v488_v60 = vld [vmem:[#allocation2 + $0x168] sm:$0xff] }
 0x1c6   : >> { %v1396_v45 = vadd.f32 %v1332_v15, %v454_v5  ;;  %v1412_v26 = vadd.f32 %v1348_v7, %v470_v14  ;;  %v504_v5 = vld [vmem:[#allocation2 + $0x1e8] sm:$0xff] }
 0x1c7   : >> { %1491 = vst.msk [vmem:[#allocation2 + $0x150] sm:$0xff] %vm277_vm0, %v1427_v53 }
 0x1c8   : >> { %1507 = vst.msk [vmem:[#allocation2 + $0x1d0] sm:$0xff] %vm277_vm0, %v1443_v20  ;;  %v1268_v29 = vpop.f32.mrf.mxu2  ;;  %v1308_v24 = vpop.f32.mrf.mxu3  ;;  %v457_v20 = vld [vmem:[#allocation2 + $0x70] sm:$0xff] }
 0x1c9   : >> { %1460 = vst.msk [vmem:[#allocation2 + $0x58] sm:$0xff] %vm277_vm0, %v1396_v45  ;;  %v1269_v36 = vadd.f32 %v1268_v29, %v5135_v49  ;;  %v1309_v3 = vadd.f32 %v1308_v24, %v869_v22  ;;  %v1191_v30 = vpop.f32.mrf.mxu0  ;;  %v1231_v11 = vpop.f32.mrf.mxu1  ;;  %v473_v45 = vld [vmem:[#allocation2 + $0xf0] sm:$0xff] }
 0x1ca   : >> { %1476 = vst.msk [vmem:[#allocation2 + $0xd8] sm:$0xff] %vm277_vm0, %v1412_v26  ;;  %v1192_v52 = vadd.f32 %v1191_v30, %v4940_v28  ;;  %v1232_v35 = vadd.f32 %v1231_v11, %v5059_v10 }
 0x1cb   : >> { %v1364_v18 = vmax.f32 %v1269_v36, 0.0  ;;  %v1380_v54 = vmax.f32 %v1309_v3, 0.0  ;;  %v884_v3 = vpop.permute.xlu1 %883 }
 0x1cc   : >> { %v1333_v31 = vmax.f32 %v1192_v52, 0.0  ;;  %v1349_v51 = vmax.f32 %v1232_v35, 0.0  ;;  %v489_v52 = vld [vmem:[#allocation2 + $0x170] sm:$0xff] }
 0x1cd   : >> { %v1428_v21 = vadd.f32 %v1364_v18, %v486_v50  ;;  %v1444_v62 = vadd.f32 %v1380_v54, %v502_v41  ;;  %v505_v35 = vld [vmem:[#allocation2 + $0x1f0] sm:$0xff]  ;;  %v6276_v54 = vld [vmem:[#allocation6_spill] sm:$0xff] }
 0x1ce   : >> { %v1397_v49 = vadd.f32 %v1333_v31, %v455_v23  ;;  %v1413_v46 = vadd.f32 %v1349_v51, %v471_v63  ;;  %v458_v51 = vld [vmem:[#allocation2 + $0x78] sm:$0xff] }
 0x1cf   : >> { %1492 = vst.msk [vmem:[#allocation2 + $0x158] sm:$0xff] %vm277_vm0, %v1428_v21  ;;  %v474_v21 = vld [vmem:[#allocation2 + $0xf8] sm:$0xff] }
 0x1d0   : >> { %1508 = vst.msk [vmem:[#allocation2 + $0x1d8] sm:$0xff] %vm277_vm0, %v1444_v62  ;;  %v1271_v47 = vpop.f32.mrf.mxu2  ;;  %v1311_v39 = vpop.f32.mrf.mxu3 }
 0x1d1   : >> { %1461 = vst.msk [vmem:[#allocation2 + $0x60] sm:$0xff] %vm277_vm0, %v1397_v49  ;;  %v1272_v28 = vadd.f32 %v1271_v47, %v5141_v2  ;;  %v1312_v10 = vadd.f32 %v1311_v39, %v874_v38  ;;  %v1193_v32 = vpop.f32.mrf.mxu0  ;;  %v1233_v43 = vpop.f32.mrf.mxu1 }
 0x1d2   : >> { %1477 = vst.msk [vmem:[#allocation2 + $0xe0] sm:$0xff] %vm277_vm0, %v1413_v46  ;;  %v1194_v19 = vadd.f32 %v1193_v32, %v4969_v37  ;;  %v1234_v0 = vadd.f32 %v1233_v43, %v5069_v16  ;;  %v889_v39 = vpop.permute.xlu2 %888  ;;  %v490_v43 = vld [vmem:[#allocation2 + $0x178] sm:$0xff] }
 0x1d3   : >> { %v1365_v48 = vmax.f32 %v1272_v28, 0.0  ;;  %v1381_v59 = vmax.f32 %v1312_v10, 0.0 }
 0x1d4   : >> { %v1334_v58 = vmax.f32 %v1194_v19, 0.0  ;;  %v1350_v27 = vmax.f32 %v1234_v0, 0.0 }
 0x1d5   : >> { %v1429_v9 = vadd.f32 %v1365_v48, %v487_v44  ;;  %v1445_v34 = vadd.f32 %v1381_v59, %v503_v56  ;;  %v506_v44 = vld [vmem:[#allocation2 + $0x1f8] sm:$0xff] }
 0x1d6   : >> { %v1398_v2 = vadd.f32 %v1334_v58, %v456_v57  ;;  %v1414_v1 = vadd.f32 %v1350_v27, %v472_v33 }
 0x1d7   : >> { %1493 = vst.msk [vmem:[#allocation2 + $0x160] sm:$0xff] %vm277_vm0, %v1429_v9 }
 0x1d8   : >> { %1509 = vst.msk [vmem:[#allocation2 + $0x1e0] sm:$0xff] %vm277_vm0, %v1445_v34  ;;  %v1273_v4 = vpop.f32.mrf.mxu2  ;;  %v1313_v12 = vpop.f32.mrf.mxu3 }
 0x1d9   : >> { %1462 = vst.msk [vmem:[#allocation2 + $0x68] sm:$0xff] %vm277_vm0, %v1398_v2  ;;  %v1274_v37 = vadd.f32 %v1273_v4, %v5137_v55  ;;  %v1314_v16 = vadd.f32 %v1313_v12, %v879_v6  ;;  %v1196_v25 = vpop.f32.mrf.mxu0  ;;  %v1236_v61 = vpop.f32.mrf.mxu1  ;;  %v1525_v12 = vld [vmem:[#allocation2 + $0x60] sm:$0xff] (%p344_p11) }
 0x1da   : >> { %1478 = vst.msk [vmem:[#allocation2 + $0xe8] sm:$0xff] %vm277_vm0, %v1414_v1  ;;  %v1197_v14 = vadd.f32 %v1196_v25, %v4982_v42  ;;  %v1237_v15 = vadd.f32 %v1236_v61, %v5061_v13  ;;  %v1524_v61 = vld [vmem:[#allocation2 + $0x58] sm:$0xff] (%p344_p11) }
 0x1db   : >> { %v1366_v7 = vmax.f32 %v1274_v37, 0.0  ;;  %v1382_v53 = vmax.f32 %v1314_v16, 0.0  ;;  %v1541_v37 = vld [vmem:[#allocation2 + $0xe0] sm:$0xff] (%p344_p11) }
 0x1dc   : >> { %v1335_v26 = vmax.f32 %v1197_v14, 0.0  ;;  %v1351_v22 = vmax.f32 %v1237_v15, 0.0  ;;  %v1572_v14 = vld [vmem:[#allocation2 + $0x1d8] sm:$0xff] (%p344_p11)  ;;  %v1523_v15 = vld [vmem:[#allocation2 + $0x50] sm:$0xff] (%p344_p11) }
 0x1dd   : >> { %v1430_v29 = vadd.f32 %v1366_v7, %v488_v60  ;;  %v1446_v24 = vadd.f32 %v1382_v53, %v504_v5  ;;  %v1540_v60 = vld [vmem:[#allocation2 + $0xd8] sm:$0xff] (%p344_p11)  ;;  %v1539_v7 = vld [vmem:[#allocation2 + $0xd0] sm:$0xff] (%p344_p11) }
 0x1de   : >> { %v1399_v55 = vadd.f32 %v1335_v26, %v457_v20  ;;  %v1415_v36 = vadd.f32 %v1351_v22, %v473_v45  ;;  %v1557_v16 = vld [vmem:[#allocation2 + $0x160] sm:$0xff] (%p344_p11)  ;;  %v1556_v5 = vld [vmem:[#allocation2 + $0x158] sm:$0xff] (%p344_p11)  ;;  %v1555_v53 = vld [vmem:[#allocation2 + $0x150] sm:$0xff] (%p344_p11) }
 0x1df   : >> { %1494 = vst.msk [vmem:[#allocation2 + $0x168] sm:$0xff] %vm277_vm0, %v1430_v29  ;;  %v1573_v25 = vld [vmem:[#allocation2 + $0x1e0] sm:$0xff] (%p344_p11)  ;;  %v1571_v20 = vld [vmem:[#allocation2 + $0x1d0] sm:$0xff] (%p344_p11)  ;;  %v1522_v45 = vld [vmem:[#allocation2 + $0x48] sm:$0xff] (%p344_p11) }
 0x1e0   : >> { %1510 = vst.msk [vmem:[#allocation2 + $0x1e8] sm:$0xff] %vm277_vm0, %v1446_v24  ;;  %v1276_v30 = vpop.f32.mrf.mxu2  ;;  %v1316_v11 = vpop.f32.mrf.mxu3  ;;  %v1526_v2 = vld [vmem:[#allocation2 + $0x68] sm:$0xff] (%p344_p11)  ;;  %v1521_v24 = vld [vmem:[#allocation2 + $0x40] sm:$0xff] (%p344_p11) }
 0x1e1   : >> { %1463 = vst.msk [vmem:[#allocation2 + $0x70] sm:$0xff] %vm277_vm0, %v1399_v55  ;;  %v1277_v42 = vadd.f32 %v1276_v30, %v5143_v8  ;;  %v1317_v13 = vadd.f32 %v1316_v11, %v884_v3  ;;  %v1198_v50 = vpop.f32.mrf.mxu0  ;;  %v1238_v41 = vpop.f32.mrf.mxu1  ;;  %v1542_v1 = vld [vmem:[#allocation2 + $0xe8] sm:$0xff] (%p344_p11)  ;;  %v1537_v55 = vld [vmem:[#allocation2 + $0xc0] sm:$0xff] (%p344_p11)  ;;  %v1520_v30 = vld [vmem:[#allocation2 + $0x38] sm:$0xff] (%p344_p11) }
 0x1e2   : >> { %1479 = vst.msk [vmem:[#allocation2 + $0xf0] sm:$0xff] %vm277_vm0, %v1415_v36  ;;  %v1199_v18 = vadd.f32 %v1198_v50, %v4977_v40  ;;  %v1239_v23 = vadd.f32 %v1238_v41, %v6276_v54  ;;  %v1538_v26 = vld [vmem:[#allocation2 + $0xc8] sm:$0xff] (%p344_p11)  ;;  %v1553_v36 = vld [vmem:[#allocation2 + $0x140] sm:$0xff] (%p344_p11)  ;;  %v1536_v11 = vld [vmem:[#allocation2 + $0xb8] sm:$0xff] (%p344_p11) }
 0x1e3   : >> { %v1367_v63 = vmax.f32 %v1277_v42, 0.0  ;;  %v1383_v31 = vmax.f32 %v1317_v13, 0.0  ;;  %v1554_v22 = vld [vmem:[#allocation2 + $0x148] sm:$0xff] (%p344_p11)  ;;  %v1569_v3 = vld [vmem:[#allocation2 + $0x1c0] sm:$0xff] (%p344_p11)  ;;  %v1552_v42 = vld [vmem:[#allocation2 + $0x138] sm:$0xff] (%p344_p11) }
 0x1e4   : >> { %v1336_v62 = vmax.f32 %v1199_v18, 0.0  ;;  %v1352_v49 = vmax.f32 %v1239_v23, 0.0  ;;  %v1570_v29 = vld [vmem:[#allocation2 + $0x1c8] sm:$0xff] (%p344_p11)  ;;  %v1568_v13 = vld [vmem:[#allocation2 + $0x1b8] sm:$0xff] (%p344_p11)  ;;  %v1519_v50 = vld [vmem:[#allocation2 + $0x30] sm:$0xff] (%p344_p11) }
 0x1e5   : >> { %v1431_v46 = vadd.f32 %v1367_v63, %v489_v52  ;;  %v1447_v38 = vadd.f32 %v1383_v31, %v505_v35  ;;  %v1535_v41 = vld [vmem:[#allocation2 + $0xb0] sm:$0xff] (%p344_p11)  ;;  %v1518_v18 = vld [vmem:[#allocation2 + $0x28] sm:$0xff] (%p344_p11)  ;;  %v1517_v31 = vld [vmem:[#allocation2 + $0x20] sm:$0xff] (%p344_p11) }
 0x1e6   : >> { %v1400_v8 = vadd.f32 %v1336_v62, %v458_v51  ;;  %v1416_v47 = vadd.f32 %v1352_v49, %v474_v21  ;;  %v1558_v6 = vld [vmem:[#allocation2 + $0x168] sm:$0xff] (%p344_p11)  ;;  %v1551_v52 = vld [vmem:[#allocation2 + $0x130] sm:$0xff] (%p344_p11)  ;;  %v1533_v51 = vld [vmem:[#allocation2 + $0xa0] sm:$0xff] (%p344_p11) }
 0x1e7   : >> { %1495 = vst.msk [vmem:[#allocation2 + $0x170] sm:$0xff] %vm277_vm0, %v1431_v46  ;;  %v1574_v4 = vld [vmem:[#allocation2 + $0x1e8] sm:$0xff] (%p344_p11)  ;;  %v1567_v35 = vld [vmem:[#allocation2 + $0x1b0] sm:$0xff] (%p344_p11)  ;;  %v1549_v21 = vld [vmem:[#allocation2 + $0x120] sm:$0xff] (%p344_p11) }
 0x1e8   : >> { %1511 = vst.msk [vmem:[#allocation2 + $0x1f0] sm:$0xff] %vm277_vm0, %v1447_v38  ;;  %v1278_v28 = vpop.f32.mrf.mxu2  ;;  %v1318_v10 = vpop.f32.mrf.mxu3  ;;  %v1527_v58 = vld [vmem:[#allocation2 + $0x70] sm:$0xff] (%p344_p11)  ;;  %v1534_v54 = vld [vmem:[#allocation2 + $0xa8] sm:$0xff] (%p344_p11)  ;;  %v1565_v62 = vld [vmem:[#allocation2 + $0x1a0] sm:$0xff] (%p344_p11) }
 0x1e9   : >> { %1464 = vst.msk [vmem:[#allocation2 + $0x78] sm:$0xff] %vm277_vm0, %v1400_v8  ;;  %v1279_v40 = vadd.f32 %v1278_v28, %v5149_v17  ;;  %v1319_v32 = vadd.f32 %v1318_v10, %v889_v39  ;;  %v1543_v27 = vld [vmem:[#allocation2 + $0xf0] sm:$0xff] (%p344_p11)  ;;  %v1550_v23 = vld [vmem:[#allocation2 + $0x128] sm:$0xff] (%p344_p11)  ;;  %v1516_v49 = vld [vmem:[#allocation2 + $0x18] sm:$0xff] (%p344_p11) }
 0x1ea   : >> { %1480 = vst.msk [vmem:[#allocation2 + $0xf8] sm:$0xff] %vm277_vm0, %v1416_v47  ;;  %v1566_v63 = vld [vmem:[#allocation2 + $0x1a8] sm:$0xff] (%p344_p11)  ;;  %v1532_v46 = vld [vmem:[#allocation2 + $0x98] sm:$0xff] (%p344_p11)  ;;  %v1515_v47 = vld [vmem:[#allocation2 + $0x10] sm:$0xff] (%p344_p11) }
 0x1eb   : >> { %v1368_v56 = vmax.f32 %v1279_v40, 0.0  ;;  %v1384_v19 = vmax.f32 %v1319_v32, 0.0  ;;  %v1548_v38 = vld [vmem:[#allocation2 + $0x118] sm:$0xff] (%p344_p11)  ;;  %v1531_v39 = vld [vmem:[#allocation2 + $0x90] sm:$0xff] (%p344_p11)  ;;  %v1514_v40 = vld [vmem:[#allocation2 + $0x8] sm:$0xff] (%p344_p11) }
 0x1ec   : > { %346 = sbr.rel (!%p344_p11) target bundleno = 86 (0x56), region = 91  ;;  %v1564_v8 = vld [vmem:[#allocation2 + $0x198] sm:$0xff] (%p344_p11)  ;;  %v1547_v28 = vld [vmem:[#allocation2 + $0x110] sm:$0xff] (%p344_p11)  ;;  %v1530_v32 = vld [vmem:[#allocation2 + $0x88] sm:$0xff] (%p344_p11) }
 0x1ed   : >> { %v1432_v0 = vadd.f32 %v1368_v56, %v490_v43  ;;  %v1448_v48 = vadd.f32 %v1384_v19, %v506_v44  ;;  %v1563_v10 = vld [vmem:[#allocation2 + $0x190] sm:$0xff] (%p344_p11)  ;;  %v1546_v43 = vld [vmem:[#allocation2 + $0x108] sm:$0xff] (%p344_p11)  ;;  %v3602_v56 = vld [vmem:[%s6265_s3 + $0xe0] sm:$0xf] (%p344_p11) }
 0x1ee   : > { %v1559_v9 = vld [vmem:[#allocation2 + $0x170] sm:$0xff] (%p344_p11)  ;;  %v1562_v44 = vld [vmem:[#allocation2 + $0x188] sm:$0xff] (%p344_p11) }
 0x1ef   : >> { %1496 = vst.msk [vmem:[#allocation2 + $0x178] sm:$0xff] %vm277_vm0, %v1432_v0  ;;  %v1575_v34 = vld [vmem:[#allocation2 + $0x1f0] sm:$0xff] (%p344_p11)  ;;  %v3730_v0 = vld [vmem:[%s6265_s3 + $0x1e0] sm:$0xf] (%p344_p11) }
 0x1f0   : >> { %1512 = vst.msk [vmem:[#allocation2 + $0x1f8] sm:$0xff] %vm277_vm0, %v1448_v48  ;;  %v1528_v17 = vld [vmem:[#allocation2 + $0x78] sm:$0xff] (%p344_p11)  ;;  %v4193_v19 = vld [vmem:[%s6265_s3 + $0xec] sm:$0xf0] (%p344_p11) }
 0x1f1   : > { %v1544_v59 = vld [vmem:[#allocation2 + $0xf8] sm:$0xff]  ;;  %3420 = vmatpush.xpose.msk.msra.mxu0 %vm277_vm0, %v1528_v17  ;;  %v4225_v48 = vld [vmem:[%s6265_s3 + $0x1ec] sm:$0xf0]  ;;  %v1513_v17 = vld [vmem:[#allocation2] sm:$0xff] }
 0x1f2   : > { %3437 = vmatpush.xpose.msk.msra.mxu1 %vm277_vm0, %v1544_v59  ;;  %v1529_v59 = vld [vmem:[#allocation2 + $0x80] sm:$0xff] }
 0x1f5   : > { %3421 = vmatpush.xpose.msk.msra.mxu0 %vm277_vm0, %v1527_v58  ;;  %v3586_v58 = vld [vmem:[%s6265_s3 + $0xc0] sm:$0xf] }
 0x1f6   : > { %v1560_v57 = vld [vmem:[#allocation2 + $0x178] sm:$0xff]  ;;  %3438 = vmatpush.xpose.msk.msra.mxu1 %vm277_vm0, %v1543_v27  ;;  %v3858_v27 = vld [vmem:[%s6265_s3 + $0x2e0] sm:$0xf] }
 0x1f7   : > { %v1576_v33 = vld [vmem:[#allocation2 + $0x1f8] sm:$0xff]  ;;  %3454 = vmatpush.xpose.msk.msra.mxu2 %vm277_vm0, %v1560_v57  ;;  %v1545_v57 = vld [vmem:[#allocation2 + $0x100] sm:$0xff] }
 0x1f8   : > { %3471 = vmatpush.xpose.msk.msra.mxu3 %vm277_vm0, %v1576_v33  ;;  %v1561_v33 = vld [vmem:[#allocation2 + $0x180] sm:$0xff] }
 0x1f9   : > { %3422 = vmatpush.xpose.msk.msra.mxu0 %vm277_vm0, %v1526_v2  ;;  %v4257_v2 = vld [vmem:[%s6265_s3 + $0x2ec] sm:$0xf0] }
 0x1fa   : > { %3439 = vmatpush.xpose.msk.msra.mxu1 %vm277_vm0, %v1542_v1  ;;  %v3986_v1 = vld [vmem:[%s6265_s3 + $0x3e0] sm:$0xf] }
 0x1fb   : > { %3455 = vmatpush.xpose.msk.msra.mxu2 %vm277_vm0, %v1559_v9  ;;  %v3603_v9 = vor.u32 %v4193_v19, %v3602_v56  ;;  %v4173_v56 = vld [vmem:[%s6265_s3 + $0x4c] sm:$0xf0]  ;;  %v3650_v19 = vld [vmem:[%s6265_s3 + $0x140] sm:$0xf] }
 0x1fc   : > { %3472 = vmatpush.xpose.msk.msra.mxu3 %vm277_vm0, %v1575_v34  ;;  %v3731_v34 = vor.u32 %v4225_v48, %v3730_v0  ;;  %v4205_v0 = vld [vmem:[%s6265_s3 + $0x14c] sm:$0xf0] }
 0x1fd   : > { %3423 = vmatpush.xpose.msk.msra.mxu0 %vm277_vm0, %v1525_v12  ;;  %v3714_v12 = vld [vmem:[%s6265_s3 + $0x1c0] sm:$0xf] }
 0x1fe   : > { %3440 = vmatpush.xpose.msk.msra.mxu1 %vm277_vm0, %v1541_v37  ;;  %v4221_v37 = vld [vmem:[%s6265_s3 + $0x1cc] sm:$0xf0] }
 0x1ff   : > { %3456 = vmatpush.xpose.msk.msra.mxu2 %vm277_vm0, %v1558_v6  ;;  %v4289_v6 = vld [vmem:[%s6265_s3 + $0x3ec] sm:$0xf0] }
 0x200   : > { %3473 = vmatpush.xpose.msk.msra.mxu3 %vm277_vm0, %v1574_v4  ;;  %v4189_v4 = vld [vmem:[%s6265_s3 + $0xcc] sm:$0xf0] }
 0x201   : > { %3424 = vmatpush.xpose.msk.msra.mxu0 %vm277_vm0, %v1524_v61  ;;  %v3570_v61 = vld [vmem:[%s6265_s3 + $0xa0] sm:$0xf] }
 0x202   : > { %3441 = vmatpush.xpose.msk.msra.mxu1 %vm277_vm0, %v1540_v60  ;;  %v3842_v60 = vld [vmem:[%s6265_s3 + $0x2c0] sm:$0xf] }
 0x203   : > { %3457 = vmatpush.xpose.msk.msra.mxu2 %vm277_vm0, %v1557_v16  ;;  %v3859_v16 = vor.u32 %v4257_v2, %v3858_v27  ;;  %v4237_v27 = vld [vmem:[%s6265_s3 + $0x24c] sm:$0xf0] }
 0x204   : > { %3474 = vmatpush.xpose.msk.msra.mxu3 %vm277_vm0, %v1573_v25  ;;  %v3987_v25 = vor.u32 %v4289_v6, %v3986_v1  ;;  %v4169_v2 = vld [vmem:[%s6265_s3 + $0x2c] sm:$0xf0]  ;;  %v3634_v1 = vld [vmem:[%s6265_s3 + $0x120] sm:$0xf] }
 0x205   : > { %3425 = vmatpush.xpose.msk.msra.mxu0 %vm277_vm0, %v1523_v15  ;;  %v4253_v15 = vld [vmem:[%s6265_s3 + $0x2cc] sm:$0xf0] }
 0x206   : > { %3442 = vmatpush.xpose.msk.msra.mxu1 %vm277_vm0, %v1539_v7  ;;  %v3970_v7 = vld [vmem:[%s6265_s3 + $0x3c0] sm:$0xf]  ;;  %v4201_v6 = vld [vmem:[%s6265_s3 + $0x12c] sm:$0xf0] }
 0x207   : > { %3458 = vmatpush.xpose.msk.msra.mxu2 %vm277_vm0, %v1556_v5  ;;  %v3587_v5 = vor.u32 %v4189_v4, %v3586_v58  ;;  %v3651_v58 = vor.u32 %v4205_v0, %v3650_v19  ;;  %v4179_v19 = vld [vmem:[%s6265_s3 + $0x84] sm:$0xf] }
 0x208   : > { %3475 = vmatpush.xpose.msk.msra.mxu3 %vm277_vm0, %v1572_v14  ;;  %v3715_v14 = vor.u32 %v4221_v37, %v3714_v12  ;;  %v3490_v37 = vld [vmem:[%s6265_s3] sm:$0xf]  ;;  %v4247_v0 = vld [vmem:[%s6265_s3 + $0x2a4] sm:$0xf] }
 0x209   : > { %3426 = vmatpush.xpose.msk.msra.mxu0 %vm277_vm0, %v1522_v45  ;;  %v4185_v45 = vld [vmem:[%s6265_s3 + $0xac] sm:$0xf0] }
 0x20a   : > { %3443 = vmatpush.xpose.msk.msra.mxu1 %vm277_vm0, %v1538_v26  ;;  %v3698_v26 = vld [vmem:[%s6265_s3 + $0x1a0] sm:$0xf] }
 0x20b   : > { %3459 = vmatpush.xpose.msk.msra.mxu2 %vm277_vm0, %v1555_v53  ;;  %v4285_v53 = vld [vmem:[%s6265_s3 + $0x3cc] sm:$0xf0] }
 0x20c   : > { %3476 = vmatpush.xpose.msk.msra.mxu3 %vm277_vm0, %v1571_v20  ;;  %v4484_v20 = vmov 0.00390625  }
 0x20d   : > { %3427 = vmatpush.xpose.msk.msra.mxu0 %vm277_vm0, %v1521_v24  ;;  %v3971_v24 = vor.u32 %v4285_v53, %v3970_v7  ;;  %v3618_v7 = vld [vmem:[%s6265_s3 + $0x100] sm:$0xf]  ;;  %v4197_v53 = vld [vmem:[%s6265_s3 + $0x10c] sm:$0xf0] }
 0x20e   : > { %3444 = vmatpush.xpose.msk.msra.mxu1 %vm277_vm0, %v1537_v55  ;;  %v3554_v55 = vld [vmem:[%s6265_s3 + $0x80] sm:$0xf] }
 0x20f   : > { %3460 = vmatpush.xpose.msk.msra.mxu2 %vm277_vm0, %v1554_v22  ;;  %v4217_v22 = vld [vmem:[%s6265_s3 + $0x1ac] sm:$0xf0] }
 0x210   : > { %3477 = vmatpush.xpose.msk.msra.mxu3 %vm277_vm0, %v1570_v29  ;;  %v3843_v29 = vor.u32 %v4253_v15, %v3842_v60  ;;  %v3635_v60 = vor.u32 %v4201_v6, %v3634_v1  ;;  %v4265_v15 = vld [vmem:[%s6265_s3 + $0x32c] sm:$0xf0]  ;;  %v4175_v1 = vld [vmem:[%s6265_s3 + $0x64] sm:$0xf] }
 0x211   : > { %3428 = vmatpush.xpose.msk.msra.mxu0 %vm277_vm0, %v1520_v30  ;;  %v3699_v30 = vor.u32 %v4217_v22, %v3698_v26  ;;  %v4223_v26 = vld [vmem:[%s6265_s3 + $0x1e4] sm:$0xf]  ;;  %v3732_v22 = vld [vmem:[%s6265_s3 + $0x1f0] sm:$0xf0] }
 0x212   : > { %3445 = vmatpush.xpose.msk.msra.mxu1 %vm277_vm0, %v1536_v11  ;;  %v4249_v11 = vld [vmem:[%s6265_s3 + $0x2ac] sm:$0xf0]  ;;  %v4243_v6 = vld [vmem:[%s6265_s3 + $0x284] sm:$0xf] }
 0x213   : > { %3461 = vmatpush.xpose.msk.msra.mxu2 %vm277_vm0, %v1553_v36  ;;  %v3826_v36 = vld [vmem:[%s6265_s3 + $0x2a0] sm:$0xf] }
 0x214   : > { %3478 = vmatpush.xpose.msk.msra.mxu3 %vm277_vm0, %v1569_v3  ;;  %v3571_v3 = vor.u32 %v4185_v45, %v3570_v61  ;;  %v3604_v45 = vld [vmem:[%s6265_s3 + $0xf0] sm:$0xf0] }
 0x215   : > { %3429 = vmatpush.xpose.msk.msra.mxu0 %vm277_vm0, %v1519_v50  ;;  %v4181_v50 = vld [vmem:[%s6265_s3 + $0x8c] sm:$0xf0] }
 0x216   : > { %3446 = vmatpush.xpose.msk.msra.mxu1 %vm277_vm0, %v1535_v41  ;;  %v3682_v41 = vld [vmem:[%s6265_s3 + $0x180] sm:$0xf] }
 0x217   : > { %3462 = vmatpush.xpose.msk.msra.mxu2 %vm277_vm0, %v1552_v42  ;;  %v3954_v42 = vld [vmem:[%s6265_s3 + $0x3a0] sm:$0xf] }
 0x218   : > { %3479 = vmatpush.xpose.msk.msra.mxu3 %vm277_vm0, %v1568_v13  ;;  %v4281_v13 = vld [vmem:[%s6265_s3 + $0x3ac] sm:$0xf0] }
 0x219   : > { %3430 = vmatpush.xpose.msk.msra.mxu0 %vm277_vm0, %v1518_v18  ;;  %v3955_v18 = vor.u32 %v4281_v13, %v3954_v42  ;;  %v3874_v42 = vld [vmem:[%s6265_s3 + $0x300] sm:$0xf]  ;;  %v4261_v13 = vld [vmem:[%s6265_s3 + $0x30c] sm:$0xf0] }
 0x21a   : > { %3447 = vmatpush.xpose.msk.msra.mxu1 %vm277_vm0, %v1534_v54  ;;  %v3538_v54 = vld [vmem:[%s6265_s3 + $0x60] sm:$0xf] }
 0x21b   : > { %3463 = vmatpush.xpose.msk.msra.mxu2 %vm277_vm0, %v1551_v52  ;;  %v4213_v52 = vld [vmem:[%s6265_s3 + $0x18c] sm:$0xf0] }
 0x21c   : > { %3480 = vmatpush.xpose.msk.msra.mxu3 %vm277_vm0, %v1567_v35  ;;  %v3827_v35 = vor.u32 %v4249_v11, %v3826_v36  ;;  %v4229_v36 = vld [vmem:[%s6265_s3 + $0x20c] sm:$0xf0]  ;;  %v4187_v11 = vld [vmem:[%s6265_s3 + $0xc4] sm:$0xf] }
 0x21d   : > { %3431 = vmatpush.xpose.msk.msra.mxu0 %vm277_vm0, %v1517_v31  ;;  %v3683_v31 = vor.u32 %v4213_v52, %v3682_v41  ;;  %v3735_v52 = vor.u32 %v4223_v26, %v3732_v22  ;;  %v3796_v26 = vld [vmem:[%s6265_s3 + $0x270] sm:$0xf0]  ;;  %v4271_v22 = vld [vmem:[%s6265_s3 + $0x364] sm:$0xf] }
 0x21e   : > { %3448 = vmatpush.xpose.msk.msra.mxu1 %vm277_vm0, %v1533_v51  ;;  %v4245_v51 = vld [vmem:[%s6265_s3 + $0x28c] sm:$0xf0] }
 0x21f   : > { %3464 = vmatpush.xpose.msk.msra.mxu2 %vm277_vm0, %v1550_v23  ;;  %v3810_v23 = vld [vmem:[%s6265_s3 + $0x280] sm:$0xf] }
 0x220   : > { %3481 = vmatpush.xpose.msk.msra.mxu3 %vm277_vm0, %v1566_v63  ;;  %v3555_v63 = vor.u32 %v4181_v50, %v3554_v55  ;;  %v3746_v55 = vld [vmem:[%s6265_s3 + $0x200] sm:$0xf]  ;;  %v4255_v50 = vld [vmem:[%s6265_s3 + $0x2e4] sm:$0xf] }
 0x221   : > { %3432 = vmatpush.xpose.msk.msra.mxu0 %vm277_vm0, %v1516_v49  ;;  %v4177_v49 = vld [vmem:[%s6265_s3 + $0x6c] sm:$0xf0] }
 0x222   : > { %3449 = vmatpush.xpose.msk.msra.mxu1 %vm277_vm0, %v1532_v46  ;;  %v3666_v46 = vld [vmem:[%s6265_s3 + $0x160] sm:$0xf] }
 0x223   : > { %3465 = vmatpush.xpose.msk.msra.mxu2 %vm277_vm0, %v1549_v21  ;;  %v3938_v21 = vld [vmem:[%s6265_s3 + $0x380] sm:$0xf] }
 0x224   : > { %3482 = vmatpush.xpose.msk.msra.mxu3 %vm277_vm0, %v1565_v62  ;;  %v4277_v62 = vld [vmem:[%s6265_s3 + $0x38c] sm:$0xf0] }
 0x225   : > { %3433 = vmatpush.xpose.msk.msra.mxu0 %vm277_vm0, %v1515_v47  ;;  %v3939_v47 = vor.u32 %v4277_v62, %v3938_v21  ;;  %v3875_v21 = vor.u32 %v4261_v13, %v3874_v42  ;;  %v4167_v13 = vld [vmem:[%s6265_s3 + $0x24] sm:$0xf] }
 0x226   : > { %3450 = vmatpush.xpose.msk.msra.mxu1 %vm277_vm0, %v1531_v39  ;;  %v3522_v39 = vld [vmem:[%s6265_s3 + $0x40] sm:$0xf] }
 0x227   : > { %3466 = vmatpush.xpose.msk.msra.mxu2 %vm277_vm0, %v1548_v38  ;;  %v4209_v38 = vld [vmem:[%s6265_s3 + $0x16c] sm:$0xf0] }
 0x228   : > { %3483 = vmatpush.xpose.msk.msra.mxu3 %vm277_vm0, %v1564_v8  ;;  %v3811_v8 = vor.u32 %v4245_v51, %v3810_v23  ;;  %v3588_v23 = vld [vmem:[%s6265_s3 + $0xd0] sm:$0xf0]  ;;  %v3747_v51 = vor.u32 %v4229_v36, %v3746_v55  ;;  %v4203_v55 = vld [vmem:[%s6265_s3 + $0x144] sm:$0xf] }
 0x229   : > { %3434 = vmatpush.xpose.msk.msra.mxu0 %vm277_vm0, %v1514_v40  ;;  %v3667_v40 = vor.u32 %v4209_v38, %v3666_v46  ;;  %v4183_v46 = vld [vmem:[%s6265_s3 + $0xa4] sm:$0xf]  ;;  %v3652_v36 = vld [vmem:[%s6265_s3 + $0x150] sm:$0xf0] }
 0x22a   : > { %3451 = vmatpush.xpose.msk.msra.mxu1 %vm277_vm0, %v1530_v32  ;;  %v4241_v32 = vld [vmem:[%s6265_s3 + $0x26c] sm:$0xf0]  ;;  %v4251_v38 = vld [vmem:[%s6265_s3 + $0x2c4] sm:$0xf]  ;;  %v3655_v42 = vor.u32 %v4203_v55, %v3652_v36  ;;  %v3850_v36 = vld [vmem:[%s6265_s3 + $0x2c8] sm:$0xf] }
 0x22b   : > { %3467 = vmatpush.xpose.msk.msra.mxu2 %vm277_vm0, %v1547_v28  ;;  %v3794_v28 = vld [vmem:[%s6265_s3 + $0x260] sm:$0xf] }
 0x22c   : > { %3484 = vmatpush.xpose.msk.msra.mxu3 %vm277_vm0, %v1563_v10  ;;  %v3539_v10 = vor.u32 %v4177_v49, %v3538_v54  ;;  %v3795_v48 = vor.u32 %v4241_v32, %v3794_v28  ;;  %v3988_v54 = vld [vmem:[%s6265_s3 + $0x3f0] sm:$0xf0]  ;;  %v4283_v28 = vld [vmem:[%s6265_s3 + $0x3c4] sm:$0xf] }
 0x22d   : > { %3435 = vmatpush.xpose.msk.msra.mxu0 %vm277_vm0, %v1513_v17  ;;  %v4215_v32 = vld [vmem:[%s6265_s3 + $0x1a4] sm:$0xf] }
 0x22e   : > { %3452 = vmatpush.xpose.msk.msra.mxu1 %vm277_vm0, %v1529_v59  ;;  %v3506_v59 = vld [vmem:[%s6265_s3 + $0x20] sm:$0xf] }
 0x22f   : > { %3468 = vmatpush.xpose.msk.msra.mxu2 %vm277_vm0, %v1546_v43  ;;  %v3922_v43 = vld [vmem:[%s6265_s3 + $0x360] sm:$0xf]  ;;  %v3507_v61 = vor.u32 %v4169_v2, %v3506_v59  ;;  %v3828_v59 = vld [vmem:[%s6265_s3 + $0x2b0] sm:$0xf0] }
 0x230   : > { %3485 = vmatpush.xpose.msk.msra.mxu3 %vm277_vm0, %v1562_v44  ;;  %3436 = vmatmul.msk.f32.vlgmr.msra.gmra.mxu0 %vm277_vm0, %v4484_v20  ;;  %v4273_v44 = vld [vmem:[%s6265_s3 + $0x36c] sm:$0xf0] }
 0x231   : > { %2634 = vmatpush.bf16.msrb.mxu0 %v3603_v9  ;;  %3453 = vmatmul.msk.f32.vlgmr.msra.gmra.mxu1 %vm277_vm0, %v4484_v20  ;;  %v3923_v17 = vor.u32 %v4273_v44, %v3922_v43  ;;  %v3906_v9 = vld [vmem:[%s6265_s3 + $0x340] sm:$0xf]  ;;  %v3700_v43 = vld [vmem:[%s6265_s3 + $0x1b0] sm:$0xf0] }
 0x232   : > { %2647 = vmatpush.bf16.msrb.mxu1 %v3731_v34  ;;  %v4269_v34 = vld [vmem:[%s6265_s3 + $0x34c] sm:$0xf0] }
 0x233   : > { %3469 = vmatpush.xpose.msk.msra.mxu2 %vm277_vm0, %v1545_v57  ;;  %v3778_v57 = vld [vmem:[%s6265_s3 + $0x240] sm:$0xf]  ;;  %v3907_v12 = vor.u32 %v4269_v34, %v3906_v9  ;;  %v3684_v9 = vld [vmem:[%s6265_s3 + $0x190] sm:$0xf0]  ;;  %v3831_v34 = vor.u32 %v4247_v0, %v3828_v59  ;;  %v4259_v0 = vld [vmem:[%s6265_s3 + $0x304] sm:$0xf] }
 0x234   : > { %3486 = vmatpush.xpose.msk.msra.mxu3 %vm277_vm0, %v1561_v33  ;;  %v3523_v33 = vor.u32 %v4173_v56, %v3522_v39  ;;  %v3779_v4 = vor.u32 %v4237_v27, %v3778_v57  ;;  %v3844_v39 = vld [vmem:[%s6265_s3 + $0x2d0] sm:$0xf0]  ;;  %v4279_v57 = vld [vmem:[%s6265_s3 + $0x3a4] sm:$0xf]  ;;  %v3610_v59 = vld [vmem:[%s6265_s3 + $0xe8] sm:$0xf] }
 0x235   : > { %2635 = vmatpush.bf16.msrb.mxu0 %v3587_v5  ;;  %v4233_v5 = vld [vmem:[%s6265_s3 + $0x22c] sm:$0xf0]  ;;  %v3847_v44 = vor.u32 %v4251_v38, %v3844_v39  ;;  %v4211_v27 = vld [vmem:[%s6265_s3 + $0x184] sm:$0xf] }
 0x236   : > { %3470 = vmatmul.msk.f32.vlgmr.msra.gmra.mxu2 %vm277_vm0, %v4484_v20  ;;  %2648 = vmatpush.bf16.msrb.mxu1 %v3715_v14  ;;  %v3890_v14 = vld [vmem:[%s6265_s3 + $0x320] sm:$0xf]  ;;  %v4231_v39 = vld [vmem:[%s6265_s3 + $0x224] sm:$0xf] }
 0x237   : > { %3487 = vmatmul.msk.f32.vlgmr.msra.gmra.mxu3 %vm277_vm0, %v4484_v20  ;;  %2660 = vmatpush.bf16.msrb.mxu2 %v3859_v16  ;;  %v4165_v16 = vld [vmem:[%s6265_s3 + $0xc] sm:$0xf0]  ;;  %v4191_v20 = vld [vmem:[%s6265_s3 + $0xe4] sm:$0xf] }
 0x238   : > { %2673 = vmatpush.bf16.msrb.mxu3 %v3987_v25  ;;  %v3762_v25 = vld [vmem:[%s6265_s3 + $0x220] sm:$0xf]  ;;  %v3607_v41 = vor.u32 %v4191_v20, %v3604_v45 }
 0x239   : > { %2636 = vmatpush.bf16.msrb.mxu0 %v3571_v3  ;;  %v3491_v3 = vor.u32 %v4165_v16, %v3490_v37  ;;  %v3812_v37 = vld [vmem:[%s6265_s3 + $0x290] sm:$0xf0]  ;;  %v4275_v16 = vld [vmem:[%s6265_s3 + $0x384] sm:$0xf] }
 0x23a   : > { %2649 = vmatpush.bf16.msrb.mxu1 %v3699_v30  ;;  %v3619_v30 = vor.u32 %v4197_v53, %v3618_v7  ;;  %v4171_v7 = vld [vmem:[%s6265_s3 + $0x44] sm:$0xf] }
 0x23b   : > { %2661 = vmatpush.bf16.msrb.mxu2 %v3843_v29  ;;  %v3763_v29 = vor.u32 %v4233_v5, %v3762_v25  ;;  %v3940_v25 = vld [vmem:[%s6265_s3 + $0x390] sm:$0xf0]  ;;  %v4239_v53 = vld [vmem:[%s6265_s3 + $0x264] sm:$0xf] }
 0x23c   : > { %2674 = vmatpush.bf16.msrb.mxu3 %v3971_v24  ;;  %v3891_v24 = vor.u32 %v4265_v15, %v3890_v14  ;;  %v3668_v5 = vld [vmem:[%s6265_s3 + $0x170] sm:$0xf0]  ;;  %v3815_v14 = vor.u32 %v4243_v6, %v3812_v37  ;;  %v3943_v15 = vor.u32 %v4275_v16, %v3940_v25  ;;  %v3722_v37 = vld [vmem:[%s6265_s3 + $0x1c8] sm:$0xf]  ;;  %v4222_v16 = vld [vmem:[%s6265_s3 + $0x1d4] sm:$0xf0] }
 0x23d   : > { %2637 = vmatpush.bf16.msrb.mxu0 %v3555_v63  ;;  %v4219_v63 = vld [vmem:[%s6265_s3 + $0x1c4] sm:$0xf]  ;;  %v3866_v25 = vld [vmem:[%s6265_s3 + $0x2e8] sm:$0xf] }
 0x23e   : > { %2650 = vmatpush.bf16.msrb.mxu1 %v3683_v31  ;;  %v3716_v31 = vld [vmem:[%s6265_s3 + $0x1d0] sm:$0xf0] }
 0x23f   : > { %2662 = vmatpush.bf16.msrb.mxu2 %v3827_v35  ;;  %v3860_v35 = vld [vmem:[%s6265_s3 + $0x2f0] sm:$0xf0] }
 0x240   : > { %2675 = vmatpush.bf16.msrb.mxu3 %v3955_v18  ;;  %v4287_v18 = vld [vmem:[%s6265_s3 + $0x3e4] sm:$0xf]  ;;  %v3863_v62 = vor.u32 %v4255_v50, %v3860_v35  ;;  %v3508_v50 = vld [vmem:[%s6265_s3 + $0x30] sm:$0xf0] }
 0x241   : > { %2638 = vmatpush.bf16.msrb.mxu0 %v3539_v10  ;;  %v3991_v49 = vor.u32 %v4287_v18, %v3988_v54  ;;  %v3972_v10 = vld [vmem:[%s6265_s3 + $0x3d0] sm:$0xf0]  ;;  %v3511_v35 = vor.u32 %v4167_v13, %v3508_v50  ;;  %v4235_v54 = vld [vmem:[%s6265_s3 + $0x244] sm:$0xf]  ;;  %v3978_v13 = vld [vmem:[%s6265_s3 + $0x3c8] sm:$0xf] }
 0x242   : > { %2651 = vmatpush.bf16.msrb.mxu1 %v3667_v40  ;;  %v3572_v40 = vld [vmem:[%s6265_s3 + $0xb0] sm:$0xf0]  ;;  %v3975_v56 = vor.u32 %v4283_v28, %v3972_v10  ;;  %v4263_v10 = vld [vmem:[%s6265_s3 + $0x324] sm:$0xf]  ;;  %v4286_v50 = vld [vmem:[%s6265_s3 + $0x3d4] sm:$0xf0] }
 0x243   : > { %2663 = vmatpush.bf16.msrb.mxu2 %v3811_v8  ;;  %v3591_v8 = vor.u32 %v4187_v11, %v3588_v23  ;;  %v3780_v23 = vld [vmem:[%s6265_s3 + $0x250] sm:$0xf0] }
 0x244   : > { %2676 = vmatpush.bf16.msrb.mxu3 %v3939_v47  ;;  %v3719_v47 = vor.u32 %v4219_v63, %v3716_v31  ;;  %v4267_v63 = vld [vmem:[%s6265_s3 + $0x344] sm:$0xf]  ;;  %v3783_v31 = vor.u32 %v4235_v54, %v3780_v23  ;;  %v3764_v28 = vld [vmem:[%s6265_s3 + $0x230] sm:$0xf0]  ;;  %v3979_v23 = vor.u32 %v4286_v50, %v3978_v13  ;;  %v3770_v13 = vld [vmem:[%s6265_s3 + $0x228] sm:$0xf] }
 0x245   : > { %2639 = vmatpush.bf16.msrb.mxu0 %v3523_v33  ;;  %v3956_v33 = vld [vmem:[%s6265_s3 + $0x3b0] sm:$0xf0]  ;;  %v4234_v50 = vld [vmem:[%s6265_s3 + $0x234] sm:$0xf0] }
 0x246   : > { %2652 = vmatpush.bf16.msrb.mxu1 %v3651_v58  ;;  %v3556_v58 = vld [vmem:[%s6265_s3 + $0x90] sm:$0xf0]  ;;  %v3959_v2 = vor.u32 %v4279_v57, %v3956_v33  ;;  %v4194_v57 = vld [vmem:[%s6265_s3 + $0xf4] sm:$0xf0]  ;;  %v3738_v33 = vld [vmem:[%s6265_s3 + $0x1e8] sm:$0xf] }
 0x247   : > { %2664 = vmatpush.bf16.msrb.mxu2 %v3795_v48  ;;  %v3575_v48 = vor.u32 %v4183_v46, %v3572_v40  ;;  %v4195_v46 = vld [vmem:[%s6265_s3 + $0x104] sm:$0xf]  ;;  %v3892_v40 = vld [vmem:[%s6265_s3 + $0x330] sm:$0xf0] }
 0x248   : > { %2677 = vmatpush.bf16.msrb.mxu3 %v3923_v17  ;;  %v3703_v17 = vor.u32 %v4215_v32, %v3700_v43  ;;  %v3767_v32 = vor.u32 %v4231_v39, %v3764_v28  ;;  %v3895_v43 = vor.u32 %v4263_v10, %v3892_v40  ;;  %v3818_v10 = vld [vmem:[%s6265_s3 + $0x288] sm:$0xf]  ;;  %v4246_v40 = vld [vmem:[%s6265_s3 + $0x294] sm:$0xf0] }
 0x249   : > { %2640 = vmatpush.bf16.msrb.mxu0 %v3507_v61  ;;  %v3540_v61 = vld [vmem:[%s6265_s3 + $0x70] sm:$0xf0] }
 0x24a   : > { %2653 = vmatpush.bf16.msrb.mxu1 %v3635_v60  ;;  %v4207_v60 = vld [vmem:[%s6265_s3 + $0x164] sm:$0xf]  ;;  %v3543_v20 = vor.u32 %v4175_v1, %v3540_v61  ;;  %v3594_v1 = vld [vmem:[%s6265_s3 + $0xc8] sm:$0xf]  ;;  %v4258_v61 = vld [vmem:[%s6265_s3 + $0x2f4] sm:$0xf0] }
 0x24b   : > { %2665 = vmatpush.bf16.msrb.mxu2 %v3779_v4  ;;  %v3559_v4 = vor.u32 %v4179_v19, %v3556_v58  ;;  %v3671_v45 = vor.u32 %v4207_v60, %v3668_v5  ;;  %v4226_v58 = vld [vmem:[%s6265_s3 + $0x1f4] sm:$0xf0]  ;;  %v3994_v60 = vld [vmem:[%s6265_s3 + $0x3e8] sm:$0xf] }
 0x24c   : > { %2678 = vmatpush.bf16.msrb.mxu3 %v3907_v12  ;;  %v3687_v12 = vor.u32 %v4211_v27, %v3684_v9 }
 0x24d   : > { %2641 = vmatpush.bf16.msrb.mxu0 %v3491_v3  ;;  %v3799_v3 = vor.u32 %v4239_v53, %v3796_v26  ;;  %v4186_v53 = vld [vmem:[%s6265_s3 + $0xb4] sm:$0xf0] }
 0x24e   : > { %2654 = vmatpush.bf16.msrb.mxu1 %v3619_v30 }
 0x24f   : > { %2666 = vmatpush.bf16.msrb.mxu2 %v3763_v29  ;;  %v3924_v29 = vld [vmem:[%s6265_s3 + $0x370] sm:$0xf0] }
 0x250   : > { %2679 = vmatpush.bf16.msrb.mxu3 %v3891_v24  ;;  %v3524_v24 = vld [vmem:[%s6265_s3 + $0x50] sm:$0xf0]  ;;  %v3927_v30 = vor.u32 %v4271_v22, %v3924_v29  ;;  %v3867_v29 = vor.u32 %v4258_v61, %v3866_v25 }
 0x251   : > { %2686 = vmatpush.bf16.msra.mxu0 %v3607_v41  ;;  %v3527_v11 = vor.u32 %v4171_v7, %v3524_v24  ;;  %v4199_v41 = vld [vmem:[%s6265_s3 + $0x124] sm:$0xf]  ;;  %v3578_v7 = vld [vmem:[%s6265_s3 + $0xa8] sm:$0xf] }
 0x252   : > { %2699 = vmatpush.bf16.msra.mxu1 %v3735_v52  ;;  %v3636_v52 = vld [vmem:[%s6265_s3 + $0x130] sm:$0xf0]  ;;  %v3579_v55 = vor.u32 %v4186_v53, %v3578_v7 }
 0x253   : > { %2667 = vmatpush.bf16.msrb.mxu2 %v3747_v51  ;;  %v3639_v18 = vor.u32 %v4199_v41, %v3636_v52  ;;  %v3908_v51 = vld [vmem:[%s6265_s3 + $0x350] sm:$0xf0]  ;;  %v3562_v41 = vld [vmem:[%s6265_s3 + $0x88] sm:$0xf]  ;;  %v4182_v52 = vld [vmem:[%s6265_s3 + $0x94] sm:$0xf0] }
 0x254   : > { %2680 = vmatpush.bf16.msrb.mxu3 %v3875_v21  ;;  %v3911_v21 = vor.u32 %v4267_v63, %v3908_v51  ;;  %v3834_v63 = vld [vmem:[%s6265_s3 + $0x2a8] sm:$0xf] }
 0x255   : > { %2687 = vmatpush.bf16.msra.mxu0 %v3591_v8  ;;  %v3620_v8 = vld [vmem:[%s6265_s3 + $0x110] sm:$0xf0] }
 0x256   : > { %2700 = vmatpush.bf16.msra.mxu1 %v3719_v47  ;;  %v3623_v47 = vor.u32 %v4195_v46, %v3620_v8  ;;  %v3546_v46 = vld [vmem:[%s6265_s3 + $0x68] sm:$0xf] }
 0x257   : > { %2712 = vmatpush.bf16.msra.mxu2 %v3863_v62  ;;  %v4163_v62 = vld [vmem:[%s6265_s3 + $0x4] sm:$0xf]  ;;  %v3674_v8 = vld [vmem:[%s6265_s3 + $0x168] sm:$0xf] }
 0x258   : > { %2725 = vmatpush.bf16.msra.mxu3 %v3991_v49  ;;  %v3492_v49 = vld [vmem:[%s6265_s3 + $0x10] sm:$0xf0] }
 0x259   : > { %2688 = vmatpush.bf16.msra.mxu0 %v3575_v48  ;;  %v3495_v38 = vor.u32 %v4163_v62, %v3492_v49  ;;  %v3876_v48 = vld [vmem:[%s6265_s3 + $0x310] sm:$0xf0]  ;;  %v3962_v62 = vld [vmem:[%s6265_s3 + $0x3a8] sm:$0xf]  ;;  %v4282_v49 = vld [vmem:[%s6265_s3 + $0x3b4] sm:$0xf0] }
 0x25a   : > { %2701 = vmatpush.bf16.msra.mxu1 %v3703_v17  ;;  %v3879_v17 = vor.u32 %v4259_v0, %v3876_v48  ;;  %v3963_v28 = vor.u32 %v4282_v49, %v3962_v62  ;;  %v4174_v0 = vld [vmem:[%s6265_s3 + $0x54] sm:$0xf0]  ;;  %v3658_v48 = vld [vmem:[%s6265_s3 + $0x148] sm:$0xf]  ;;  %v3724_v49 = vld [vmem:[%s6265_s3 + $0x1d8] sm:$0xf0] }
 0x25b   : > { %2713 = vmatpush.bf16.msra.mxu2 %v3847_v44  ;;  %v4227_v44 = vld [vmem:[%s6265_s3 + $0x204] sm:$0xf] }
 0x25c   : > { %2726 = vmatpush.bf16.msra.mxu3 %v3975_v56  ;;  %v3748_v56 = vld [vmem:[%s6265_s3 + $0x210] sm:$0xf0] }
 0x25d   : > { %2689 = vmatpush.bf16.msra.mxu0 %v3559_v4  ;;  %v3751_v19 = vor.u32 %v4227_v44, %v3748_v56 }
 0x25e   : > { %2702 = vmatpush.bf16.msra.mxu1 %v3687_v12  ;;  %v4190_v12 = vld [vmem:[%s6265_s3 + $0xd4] sm:$0xf0] }
 0x25f   : > { %2714 = vmatpush.bf16.msra.mxu2 %v3831_v34  ;;  %v3611_v34 = vor.u32 %v4194_v57, %v3610_v59  ;;  %v3595_v5 = vor.u32 %v4190_v12, %v3594_v1  ;;  %v3819_v59 = vor.u32 %v4246_v40, %v3818_v10  ;;  %v3514_v1 = vld [vmem:[%s6265_s3 + $0x28] sm:$0xf]  ;;  %v4170_v12 = vld [vmem:[%s6265_s3 + $0x34] sm:$0xf0]  ;;  %v4288_v10 = vld [vmem:[%s6265_s3 + $0x3ec] sm:$0xf] }
 0x260   : > { %2727 = vmatpush.bf16.msra.mxu3 %v3959_v2  ;;  %v3739_v2 = vor.u32 %v4226_v58, %v3738_v33  ;;  %v3802_v33 = vld [vmem:[%s6265_s3 + $0x268] sm:$0xf]  ;;  %v4242_v58 = vld [vmem:[%s6265_s3 + $0x274] sm:$0xf0]  ;;  %v3515_v7 = vor.u32 %v4170_v12, %v3514_v1  ;;  %v3996_v40 = vld [vmem:[%s6265_s3 + $0x3f8] sm:$0xf0] }
 0x261   : > { %2690 = vmatpush.bf16.msra.mxu0 %v3543_v20  ;;  %v3706_v20 = vld [vmem:[%s6265_s3 + $0x1a8] sm:$0xf]  ;;  %v3803_v25 = vor.u32 %v4242_v58, %v3802_v33  ;;  %v4252_v33 = vld [vmem:[%s6265_s3 + $0x2cc] sm:$0xf]  ;;  %v3852_v58 = vld [vmem:[%s6265_s3 + $0x2d8] sm:$0xf0] }
 0x262   : > { %2703 = vmatpush.bf16.msra.mxu1 %v3671_v45  ;;  %v4218_v45 = vld [vmem:[%s6265_s3 + $0x1b4] sm:$0xf0]  ;;  %v4180_v1 = vld [vmem:[%s6265_s3 + $0x8c] sm:$0xf]  ;;  %v3564_v12 = vld [vmem:[%s6265_s3 + $0x98] sm:$0xf0] }
 0x263   : > { %2715 = vmatpush.bf16.msra.mxu2 %v3815_v14  ;;  %v3723_v14 = vor.u32 %v4222_v16, %v3722_v37  ;;  %v3642_v37 = vld [vmem:[%s6265_s3 + $0x128] sm:$0xf]  ;;  %v4202_v16 = vld [vmem:[%s6265_s3 + $0x134] sm:$0xf0] }
 0x264   : > { %2728 = vmatpush.bf16.msra.mxu3 %v3943_v15  ;;  %v4290_v15 = vld [vmem:[%s6265_s3 + $0x3f4] sm:$0xf0]  ;;  %v3643_v53 = vor.u32 %v4202_v16, %v3642_v37  ;;  %v4212_v37 = vld [vmem:[%s6265_s3 + $0x18c] sm:$0xf]  ;;  %v3692_v16 = vld [vmem:[%s6265_s3 + $0x198] sm:$0xf0] }
 0x265   : > { %2691 = vmatpush.bf16.msra.mxu0 %v3527_v11  ;;  %v3995_v24 = vor.u32 %v4290_v15, %v3994_v60  ;;  %v3786_v60 = vld [vmem:[%s6265_s3 + $0x248] sm:$0xf]  ;;  %v4270_v15 = vld [vmem:[%s6265_s3 + $0x354] sm:$0xf0] }
 0x266   : > { %2704 = vmatpush.bf16.msra.mxu1 %v3655_v42  ;;  %v3707_v42 = vor.u32 %v4218_v45, %v3706_v20  ;;  %v3498_v20 = vld [vmem:[%s6265_s3 + $0x8] sm:$0xf]  ;;  %v4166_v45 = vld [vmem:[%s6265_s3 + $0x14] sm:$0xf0] }
 0x267   : > { %2716 = vmatpush.bf16.msra.mxu2 %v3799_v3  ;;  %v4254_v3 = vld [vmem:[%s6265_s3 + $0x2d4] sm:$0xf0] }
 0x268   : > { %2729 = vmatpush.bf16.msra.mxu3 %v3927_v30  ;;  %v3851_v54 = vor.u32 %v4254_v3, %v3850_v36  ;;  %v4224_v3 = vld [vmem:[%s6265_s3 + $0x1ec] sm:$0xf] }
 0x269   : > { %2692 = vmatpush.bf16.msra.mxu0 %v3511_v35  ;;  %v3690_v35 = vld [vmem:[%s6265_s3 + $0x188] sm:$0xf] }
 0x26a   : > { %2705 = vmatpush.bf16.msra.mxu1 %v3639_v18  ;;  %v4214_v18 = vld [vmem:[%s6265_s3 + $0x194] sm:$0xf0] }
 0x26b   : > { %2717 = vmatpush.bf16.msra.mxu2 %v3783_v31  ;;  %v3563_v31 = vor.u32 %v4182_v52, %v3562_v41  ;;  %v3691_v51 = vor.u32 %v4214_v18, %v3690_v35  ;;  %v3898_v41 = vld [vmem:[%s6265_s3 + $0x328] sm:$0xf]  ;;  %v4266_v52 = vld [vmem:[%s6265_s3 + $0x334] sm:$0xf0]  ;;  %v3499_v35 = vor.u32 %v4166_v45, %v3498_v20  ;;  %v4176_v20 = vld [vmem:[%s6265_s3 + $0x6c] sm:$0xf] }
 0x26c   : > { %2730 = vmatpush.bf16.msra.mxu3 %v3911_v21  ;;  %v4250_v21 = vld [vmem:[%s6265_s3 + $0x2b4] sm:$0xf0]  ;;  %v3899_v62 = vor.u32 %v4266_v52, %v3898_v41  ;;  %v3548_v45 = vld [vmem:[%s6265_s3 + $0x78] sm:$0xf0]  ;;  %v4172_v41 = vld [vmem:[%s6265_s3 + $0x4c] sm:$0xf] }
 0x26d   : > { %2693 = vmatpush.bf16.msra.mxu0 %v3495_v38  ;;  %v4178_v38 = vld [vmem:[%s6265_s3 + $0x74] sm:$0xf0]  ;;  %v3835_v39 = vor.u32 %v4250_v21, %v3834_v63  ;;  %v4188_v63 = vld [vmem:[%s6265_s3 + $0xcc] sm:$0xf]  ;;  %v3771_v21 = vor.u32 %v4234_v50, %v3770_v13  ;;  %v3551_v13 = vor.u32 %v4176_v20, %v3548_v45  ;;  %v3532_v52 = vld [vmem:[%s6265_s3 + $0x58] sm:$0xf0] }
 0x26e   : > { %2706 = vmatpush.bf16.msra.mxu1 %v3623_v47  ;;  %v4210_v47 = vld [vmem:[%s6265_s3 + $0x174] sm:$0xf0]  ;;  %v3547_v44 = vor.u32 %v4178_v38, %v3546_v46  ;;  %v3754_v46 = vld [vmem:[%s6265_s3 + $0x208] sm:$0xf] }
 0x26f   : > { %2718 = vmatpush.bf16.msra.mxu2 %v3767_v32  ;;  %v3946_v32 = vld [vmem:[%s6265_s3 + $0x388] sm:$0xf]  ;;  %v3675_v56 = vor.u32 %v4210_v47, %v3674_v8  ;;  %v4230_v38 = vld [vmem:[%s6265_s3 + $0x214] sm:$0xf0] }
 0x270   : > { %2731 = vmatpush.bf16.msra.mxu3 %v3895_v43  ;;  %v4278_v43 = vld [vmem:[%s6265_s3 + $0x394] sm:$0xf0]  ;;  %v3882_v8 = vld [vmem:[%s6265_s3 + $0x308] sm:$0xf] }
 0x271   : > { %v3947_v57 = vor.u32 %v4278_v43, %v3946_v32  ;;  %v4262_v47 = vld [vmem:[%s6265_s3 + $0x314] sm:$0xf0]  ;;  %v4292_v20 = vld [vmem:[%s6267_s5 + $0x8] sm:$0xff] }
 0x272   : > { %v4304_v45 = vld [vmem:[%s6267_s5 + $0x68] sm:$0xff] }
 0x273   : > { %2719 = vmatpush.bf16.msra.mxu2 %v3751_v19  ;;  %v3530_v19 = vld [vmem:[%s6265_s3 + $0x48] sm:$0xf] }
 0x274   : > { %2732 = vmatpush.bf16.msra.mxu3 %v3879_v17  ;;  %v4206_v17 = vld [vmem:[%s6265_s3 + $0x154] sm:$0xf0] }
 0x2ad   : > { %v1789_v27 = vpop.f32.mrf.mxu0 }
 0x2ae   : > { %v1809_v9 = vpop.f32.mrf.mxu1  ;;  %v5726_v6 = vpack.c.bf16 %v1789_v27, %v1789_v27  ;;  %v3930_v27 = vld [vmem:[%s6265_s3 + $0x368] sm:$0xf] }
 0x2af   : > { %v5728_v4 = vpack.c.bf16 %v1809_v9, %v1809_v9  ;;  %v4274_v9 = vld [vmem:[%s6265_s3 + $0x374] sm:$0xf0] }
 0x2b0   : > { %2642 = vmatmul.bf16.vlgmr.msrb.gmra.mxu0 %v5726_v6  ;;  %v3931_v61 = vor.u32 %v4274_v9, %v3930_v27  ;;  %v4284_v27 = vld [vmem:[%s6265_s3 + $0x3cc] sm:$0xf]  ;;  %v3980_v9 = vld [vmem:[%s6265_s3 + $0x3d8] sm:$0xf0] }
 0x2b1   : > { %2655 = vmatmul.bf16.vlgmr.msrb.gmra.mxu1 %v5728_v4  ;;  %2738 = vmatpush.bf16.msrb.mxu0 %v3611_v34  ;;  %v3531_v34 = vor.u32 %v4174_v0, %v3530_v19  ;;  %v3883_v19 = vor.u32 %v4262_v47, %v3882_v8  ;;  %v3580_v0 = vld [vmem:[%s6265_s3 + $0xb8] sm:$0xf0]  ;;  %v4200_v8 = vld [vmem:[%s6265_s3 + $0x12c] sm:$0xf] }
 0x2b2   : > { %2751 = vmatpush.bf16.msrb.mxu1 %v3739_v2  ;;  %v3659_v2 = vor.u32 %v4206_v17, %v3658_v48  ;;  %v4216_v48 = vld [vmem:[%s6265_s3 + $0x1ac] sm:$0xf]  ;;  %v3708_v17 = vld [vmem:[%s6265_s3 + $0x1b8] sm:$0xf0] }
 0x2b3   : > { %v3644_v47 = vld [vmem:[%s6265_s3 + $0x138] sm:$0xf0] }
 0x2b5   : > { %2739 = vmatpush.bf16.msrb.mxu0 %v3595_v5  ;;  %v4238_v5 = vld [vmem:[%s6265_s3 + $0x254] sm:$0xf0] }
 0x2b6   : > { %2752 = vmatpush.bf16.msrb.mxu1 %v3723_v14  ;;  %v3914_v14 = vld [vmem:[%s6265_s3 + $0x348] sm:$0xf] }
 0x2b7   : > { %v3915_v36 = vor.u32 %v4270_v15, %v3914_v14  ;;  %v4280_v14 = vld [vmem:[%s6265_s3 + $0x3ac] sm:$0xf]  ;;  %v3964_v15 = vld [vmem:[%s6265_s3 + $0x3b8] sm:$0xf0] }
 0x2b9   : > { %v1829_v26 = vpop.f32.mrf.mxu2  ;;  %2740 = vmatpush.bf16.msrb.mxu0 %v3579_v55  ;;  %v3787_v55 = vor.u32 %v4238_v5, %v3786_v60  ;;  %v4248_v60 = vld [vmem:[%s6265_s3 + $0x2ac] sm:$0xf]  ;;  %v3836_v5 = vld [vmem:[%s6265_s3 + $0x2b8] sm:$0xf0] }
 0x2ba   : > { %v1849_v22 = vpop.f32.mrf.mxu3  ;;  %v5771_v30 = vpack.c.bf16 %v1829_v26, %v1829_v26  ;;  %2753 = vmatpush.bf16.msrb.mxu1 %v3707_v42  ;;  %v3626_v26 = vld [vmem:[%s6265_s3 + $0x108] sm:$0xf]  ;;  %v3740_v42 = vld [vmem:[%s6265_s3 + $0x1f8] sm:$0xf0] }
 0x2bb   : > { %v5773_v11 = vpack.c.bf16 %v1849_v22, %v1849_v22  ;;  %v4198_v22 = vld [vmem:[%s6265_s3 + $0x114] sm:$0xf0] }
 0x2bc   : > { %2668 = vmatmul.bf16.vlgmr.msrb.gmra.mxu2 %v5771_v30  ;;  %v3627_v18 = vor.u32 %v4198_v22, %v3626_v26  ;;  %v4208_v26 = vld [vmem:[%s6265_s3 + $0x16c] sm:$0xf]  ;;  %v3676_v22 = vld [vmem:[%s6265_s3 + $0x178] sm:$0xf0] }
 0x2bd   : > { %2681 = vmatmul.bf16.vlgmr.msrb.gmra.mxu3 %v5773_v11  ;;  %2764 = vmatpush.bf16.msrb.mxu2 %v3867_v29  ;;  %v4192_v29 = vld [vmem:[%s6265_s3 + $0xec] sm:$0xf]  ;;  %v3679_v50 = vor.u32 %v4208_v26, %v3676_v22  ;;  %v4291_v26 = vld [vmem:[%s6267_s5] sm:$0xff] }
 0x2be   : > { %2777 = vmatpush.bf16.msrb.mxu3 %v3995_v24  ;;  %2741 = vmatpush.bf16.msrb.mxu0 %v3563_v31  ;;  %v3612_v24 = vld [vmem:[%s6265_s3 + $0xf8] sm:$0xf0]  ;;  %v4303_v22 = vld [vmem:[%s6267_s5 + $0x60] sm:$0xff] }
 0x2bf   : > { %2754 = vmatpush.bf16.msrb.mxu1 %v3691_v51  ;;  %v3596_v31 = vld [vmem:[%s6265_s3 + $0xd8] sm:$0xf0]  ;;  %v4220_v51 = vld [vmem:[%s6265_s3 + $0x1cc] sm:$0xf] }
 0x2c0   : > { %2694 = vmatmul.bf16.vlgmr.msra.gmra.mxu0 %v5726_v6  ;;  %v3599_v32 = vor.u32 %v4188_v63, %v3596_v31  ;;  %v3727_v43 = vor.u32 %v4220_v51, %v3724_v49  ;;  %v4240_v63 = vld [vmem:[%s6265_s3 + $0x26c] sm:$0xf]  ;;  %v3804_v31 = vld [vmem:[%s6265_s3 + $0x278] sm:$0xf0] }
 0x2c1   : > { %2765 = vmatpush.bf16.msrb.mxu2 %v3851_v54  ;;  %2707 = vmatmul.bf16.vlgmr.msra.gmra.mxu1 %v5728_v4  ;;  %v3615_v54 = vor.u32 %v4192_v29, %v3612_v24  ;;  %v3839_v29 = vor.u32 %v4248_v60, %v3836_v5  ;;  %v3967_v24 = vor.u32 %v4280_v14, %v3964_v15  ;;  %v4272_v51 = vld [vmem:[%s6265_s3 + $0x36c] sm:$0xf]  ;;  %v3884_v60 = vld [vmem:[%s6265_s3 + $0x318] sm:$0xf0]  ;;  %v4297_v5 = vld [vmem:[%s6267_s5 + $0x30] sm:$0xff] }
 0x2c2   : > { %2778 = vmatpush.bf16.msrb.mxu3 %v3979_v23  ;;  %2742 = vmatpush.bf16.msrb.mxu0 %v3547_v44  ;;  %v3743_v23 = vor.u32 %v4224_v3, %v3740_v42  ;;  %v4184_v44 = vld [vmem:[%s6265_s3 + $0xac] sm:$0xf]  ;;  %v3948_v42 = vld [vmem:[%s6265_s3 + $0x398] sm:$0xf0] }
 0x2c3   : > { %2755 = vmatpush.bf16.msrb.mxu1 %v3675_v56  ;;  %v3755_v56 = vor.u32 %v4230_v38, %v3754_v46  ;;  %v4276_v3 = vld [vmem:[%s6265_s3 + $0x38c] sm:$0xf]  ;;  %v3516_v38 = vld [vmem:[%s6265_s3 + $0x38] sm:$0xf0] }
 0x2c4   : > { %v4168_v46 = vld [vmem:[%s6265_s3 + $0x2c] sm:$0xf] }
 0x2c5   : > { %2766 = vmatpush.bf16.msrb.mxu2 %v3835_v39  ;;  %v4256_v39 = vld [vmem:[%s6265_s3 + $0x2ec] sm:$0xf] }
 0x2c6   : > { %2779 = vmatpush.bf16.msrb.mxu3 %v3963_v28  ;;  %2743 = vmatpush.bf16.msrb.mxu0 %v3531_v34  ;;  %v3868_v28 = vld [vmem:[%s6265_s3 + $0x2f8] sm:$0xf0]  ;;  %v3583_v34 = vor.u32 %v4184_v44, %v3580_v0  ;;  %v3519_v44 = vor.u32 %v4168_v46, %v3516_v38  ;;  %v4308_v38 = vld [vmem:[%s6267_s5 + $0x88] sm:$0xff] }
 0x2c7   : > { %2756 = vmatpush.bf16.msrb.mxu1 %v3659_v2  ;;  %v3711_v2 = vor.u32 %v4216_v48, %v3708_v17  ;;  %v3500_v0 = vld [vmem:[%s6265_s3 + $0x18] sm:$0xf0]  ;;  %v4196_v48 = vld [vmem:[%s6265_s3 + $0x10c] sm:$0xf] }
 0x2c8   : > { %v3628_v17 = vld [vmem:[%s6265_s3 + $0x118] sm:$0xf0] }
 0x2c9   : > { %2767 = vmatpush.bf16.msrb.mxu2 %v3819_v59  ;;  %v3871_v59 = vor.u32 %v4256_v39, %v3868_v28  ;;  %v3807_v39 = vor.u32 %v4240_v63, %v3804_v31 }
 0x2ca   : > { %2780 = vmatpush.bf16.msrb.mxu3 %v3947_v57  ;;  %2744 = vmatpush.bf16.msrb.mxu0 %v3515_v7  ;;  %v3999_v57 = vor.u32 %v4288_v10, %v3996_v40  ;;  %v3567_v7 = vor.u32 %v4180_v1, %v3564_v12  ;;  %v4236_v10 = vld [vmem:[%s6265_s3 + $0x24c] sm:$0xf]  ;;  %v3788_v40 = vld [vmem:[%s6265_s3 + $0x258] sm:$0xf0] }
 0x2cb   : > { %2757 = vmatpush.bf16.msrb.mxu1 %v3643_v53  ;;  %v3695_v53 = vor.u32 %v4212_v37, %v3692_v16  ;;  %v4298_v1 = vld [vmem:[%s6267_s5 + $0x38] sm:$0xff]  ;;  %v4228_v16 = vld [vmem:[%s6265_s3 + $0x20c] sm:$0xf] }
 0x2cc   : > { %2720 = vmatmul.bf16.vlgmr.msra.gmra.mxu2 %v5771_v30 }
 0x2cd   : > { %2733 = vmatmul.bf16.vlgmr.msra.gmra.mxu3 %v5773_v11  ;;  %2768 = vmatpush.bf16.msrb.mxu2 %v3803_v25  ;;  %v3855_v25 = vor.u32 %v4252_v33, %v3852_v58  ;;  %v4232_v33 = vld [vmem:[%s6265_s3 + $0x22c] sm:$0xf]  ;;  %v3772_v58 = vld [vmem:[%s6265_s3 + $0x238] sm:$0xf0] }
 0x2ce   : > { %2781 = vmatpush.bf16.msrb.mxu3 %v3931_v61  ;;  %2745 = vmatpush.bf16.msrb.mxu0 %v3499_v35  ;;  %v3983_v61 = vor.u32 %v4284_v27, %v3980_v9  ;;  %v4204_v35 = vld [vmem:[%s6265_s3 + $0x14c] sm:$0xf]  ;;  %v3900_v9 = vld [vmem:[%s6265_s3 + $0x338] sm:$0xf0]  ;;  %v3775_v12 = vor.u32 %v4232_v33, %v3772_v58 }
 0x2cf   : > { %2758 = vmatpush.bf16.msrb.mxu1 %v3627_v18  ;;  %v3660_v18 = vld [vmem:[%s6265_s3 + $0x158] sm:$0xf0]  ;;  %v4264_v27 = vld [vmem:[%s6265_s3 + $0x32c] sm:$0xf] }
 0x2d0   : > { %v3663_v49 = vor.u32 %v4204_v35, %v3660_v18  ;;  %v3903_v37 = vor.u32 %v4264_v27, %v3900_v9  ;;  %v4299_v35 = vld [vmem:[%s6267_s5 + $0x40] sm:$0xff] }
 0x2d1   : > { %2769 = vmatpush.bf16.msrb.mxu2 %v3787_v55  ;;  %2746 = vmatmul.bf16.vlgmr.msrb.gmra.mxu0 %v5726_v6  ;;  %v4244_v55 = vld [vmem:[%s6265_s3 + $0x28c] sm:$0xf]  ;;  %v4311_v18 = vld [vmem:[%s6267_s5 + $0xa0] sm:$0xff] }
 0x2d2   : > { %2782 = vmatpush.bf16.msrb.mxu3 %v3915_v36  ;;  %2790 = vmatpush.bf16.msra.mxu0 %v3615_v54  ;;  %v3820_v36 = vld [vmem:[%s6265_s3 + $0x298] sm:$0xf0]  ;;  %v4319_v9 = vld [vmem:[%s6267_s5 + $0xe0] sm:$0xff] }
 0x2d3   : > { %2803 = vmatpush.bf16.msra.mxu1 %v3743_v23  ;;  %v3823_v54 = vor.u32 %v4244_v55, %v3820_v36  ;;  %v3951_v23 = vor.u32 %v4276_v3, %v3948_v42  ;;  %v4301_v55 = vld [vmem:[%s6267_s5 + $0x50] sm:$0xff]  ;;  %v4300_v3 = vld [vmem:[%s6267_s5 + $0x48] sm:$0xff] }
 0x2d4   : > { %2759 = vmatmul.bf16.vlgmr.msrb.gmra.mxu1 %v5728_v4  ;;  %v4313_v36 = vld [vmem:[%s6267_s5 + $0xb0] sm:$0xff]  ;;  %v4312_v42 = vld [vmem:[%s6267_s5 + $0xa8] sm:$0xff] }
 0x2d5   : > { %2770 = vmatpush.bf16.msrb.mxu2 %v3771_v21  ;;  %v3932_v21 = vld [vmem:[%s6265_s3 + $0x378] sm:$0xf0] }
 0x2d6   : > { %2783 = vmatpush.bf16.msrb.mxu3 %v3899_v62  ;;  %2791 = vmatpush.bf16.msra.mxu0 %v3599_v32  ;;  %v3535_v62 = vor.u32 %v4172_v41, %v3532_v52  ;;  %v3935_v28 = vor.u32 %v4272_v51, %v3932_v21  ;;  %v4268_v32 = vld [vmem:[%s6265_s3 + $0x34c] sm:$0xf]  ;;  %v4309_v51 = vld [vmem:[%s6267_s5 + $0x90] sm:$0xff] }
 0x2d7   : > { %2804 = vmatpush.bf16.msra.mxu1 %v3727_v43  ;;  %v3916_v43 = vld [vmem:[%s6265_s3 + $0x358] sm:$0xf0] }
 0x2d9   : > { %2771 = vmatpush.bf16.msrb.mxu2 %v3755_v56  ;;  %v3647_v56 = vor.u32 %v4200_v8, %v3644_v47 }
 0x2da   : > { %2784 = vmatpush.bf16.msrb.mxu3 %v3883_v19  ;;  %2792 = vmatpush.bf16.msra.mxu0 %v3583_v34  ;;  %v4164_v19 = vld [vmem:[%s6265_s3 + $0xc] sm:$0xf] }
 0x2db   : > { %2805 = vmatpush.bf16.msra.mxu1 %v3711_v2  ;;  %v3503_v34 = vor.u32 %v4164_v19, %v3500_v0  ;;  %v3631_v2 = vor.u32 %v4196_v48, %v3628_v17  ;;  %v4321_v19 = vld [vmem:[%s6267_s5 + $0xf0] sm:$0xff]  ;;  %v4320_v48 = vld [vmem:[%s6267_s5 + $0xe8] sm:$0xff] }
 0x2dc   : > { %2772 = vmatmul.bf16.vlgmr.msrb.gmra.mxu2 %v5771_v30 }
 0x2dd   : > { %2816 = vmatpush.bf16.msra.mxu2 %v3871_v59  ;;  %2785 = vmatmul.bf16.vlgmr.msrb.gmra.mxu3 %v5773_v11  ;;  %v3791_v59 = vor.u32 %v4236_v10, %v3788_v40  ;;  %v4307_v10 = vld [vmem:[%s6267_s5 + $0x80] sm:$0xff]  ;;  %v4322_v40 = vld [vmem:[%s6267_s5 + $0xf8] sm:$0xff] }
 0x2de   : > { %2829 = vmatpush.bf16.msra.mxu3 %v3999_v57  ;;  %2793 = vmatpush.bf16.msra.mxu0 %v3567_v7  ;;  %v3919_v57 = vor.u32 %v4268_v32, %v3916_v43  ;;  %v4296_v7 = vld [vmem:[%s6267_s5 + $0x28] sm:$0xff] }
 0x2df   : > { %2806 = vmatpush.bf16.msra.mxu1 %v3695_v53  ;;  %v4295_v53 = vld [vmem:[%s6267_s5 + $0x20] sm:$0xff] }
 0x2e1   : > { %2817 = vmatpush.bf16.msra.mxu2 %v3855_v25  ;;  %v3756_v25 = vld [vmem:[%s6265_s3 + $0x218] sm:$0xf0] }
 0x2e2   : > { %2830 = vmatpush.bf16.msra.mxu3 %v3983_v61  ;;  %2794 = vmatpush.bf16.msra.mxu0 %v3551_v13  ;;  %v4260_v61 = vld [vmem:[%s6265_s3 + $0x30c] sm:$0xf]  ;;  %v3759_v14 = vor.u32 %v4228_v16, %v3756_v25  ;;  %v6176_v13 = vld [vmem:[%s6266_s4] sm:$0xf] }
 0x2e3   : > { %2807 = vmatpush.bf16.msra.mxu1 %v3679_v50  ;;  %v3887_v15 = vor.u32 %v4260_v61, %v3884_v60  ;;  %v2626_v52 = vperm.slane %v6176_v13, 0  ;;  %v2627_v43 = vperm.slane %v6176_v13, 1  ;;  %v2628_v25 = vperm.slane %v6176_v13, 2 }
 0x2e5   : > { %2818 = vmatpush.bf16.msra.mxu2 %v3839_v29  ;;  %v4302_v29 = vld [vmem:[%s6267_s5 + $0x58] sm:$0xff] }
 0x2e6   : > { %2831 = vmatpush.bf16.msra.mxu3 %v3967_v24  ;;  %2795 = vmatpush.bf16.msra.mxu0 %v3535_v62  ;;  %v4314_v24 = vld [vmem:[%s6267_s5 + $0xb8] sm:$0xff] }
 0x2e7   : > { %2808 = vmatpush.bf16.msra.mxu1 %v3663_v49 }
 0x2e9   : > { %2819 = vmatpush.bf16.msra.mxu2 %v3823_v54 }
 0x2ea   : > { %2832 = vmatpush.bf16.msra.mxu3 %v3951_v23  ;;  %2796 = vmatpush.bf16.msra.mxu0 %v3519_v44  ;;  %v4310_v23 = vld [vmem:[%s6267_s5 + $0x98] sm:$0xff] }
 0x2eb   : > { %2809 = vmatpush.bf16.msra.mxu1 %v3647_v56 }
 0x2ed   : > { %2820 = vmatpush.bf16.msra.mxu2 %v3807_v39 }
 0x2ee   : > { %2833 = vmatpush.bf16.msra.mxu3 %v3935_v28  ;;  %2797 = vmatpush.bf16.msra.mxu0 %v3503_v34 }
 0x2ef   : > { %2810 = vmatpush.bf16.msra.mxu1 %v3631_v2 }
 0x2f1   : > { %2821 = vmatpush.bf16.msra.mxu2 %v3791_v59  ;;  %2798 = vmatmul.bf16.vlgmr.msra.gmra.mxu0 %v5726_v6  ;;  %v4306_v6 = vld [vmem:[%s6267_s5 + $0x78] sm:$0xff] }
 0x2f2   : > { %2834 = vmatpush.bf16.msra.mxu3 %v3919_v57  ;;  %3107 = vmatpush.bf16.msrb.mxu0 %v4298_v1 }
 0x2f3   : > { %2811 = vmatmul.bf16.vlgmr.msra.gmra.mxu1 %v5728_v4  ;;  %v4294_v4 = vld [vmem:[%s6267_s5 + $0x18] sm:$0xff] }
 0x2f4   : > { %3120 = vmatpush.bf16.msrb.mxu1 %v4306_v6 }
 0x2f5   : > { %2822 = vmatpush.bf16.msra.mxu2 %v3775_v12  ;;  %v4318_v12 = vld [vmem:[%s6267_s5 + $0xd8] sm:$0xff] }
 0x2f6   : > { %2835 = vmatpush.bf16.msra.mxu3 %v3903_v37  ;;  %3108 = vmatpush.bf16.msrb.mxu0 %v4297_v5  ;;  %v4317_v5 = vld [vmem:[%s6267_s5 + $0xd0] sm:$0xff] }
 0x2f9   : > { %2823 = vmatpush.bf16.msra.mxu2 %v3759_v14 }
 0x2fa   : > { %2836 = vmatpush.bf16.msra.mxu3 %v3887_v15  ;;  %3109 = vmatpush.bf16.msrb.mxu0 %v4296_v7 }
 0x2fc   : > { %2824 = vmatmul.bf16.vlgmr.msra.gmra.mxu2 %v5771_v30  ;;  %v4293_v30 = vld [vmem:[%s6267_s5 + $0x10] sm:$0xff] }
 0x2fd   : > { %2837 = vmatmul.bf16.vlgmr.msra.gmra.mxu3 %v5773_v11  ;;  %v4305_v11 = vld [vmem:[%s6267_s5 + $0x70] sm:$0xff]  ;;  %3133 = vmatpush.bf16.msrb.mxu2 %v4314_v24 }
 0x2fe   : > { %3110 = vmatpush.bf16.msrb.mxu0 %v4295_v53  ;;  %3121 = vmatpush.bf16.msrb.mxu1 %v4305_v11  ;;  %v4316_v53 = vld [vmem:[%s6267_s5 + $0xc8] sm:$0xff]  ;;  %v4315_v11 = vld [vmem:[%s6267_s5 + $0xc0] sm:$0xff] }
 0x2ff   : > { %3146 = vmatpush.bf16.msrb.mxu3 %v4322_v40 }
 0x301   : > { %3134 = vmatpush.bf16.msrb.mxu2 %v4313_v36 }
 0x302   : > { %3111 = vmatpush.bf16.msrb.mxu0 %v4294_v4  ;;  %3122 = vmatpush.bf16.msrb.mxu1 %v4304_v45 }
 0x303   : > { %3147 = vmatpush.bf16.msrb.mxu3 %v4321_v19 }
 0x305   : > { %3135 = vmatpush.bf16.msrb.mxu2 %v4312_v42 }
 0x306   : > { %3112 = vmatpush.bf16.msrb.mxu0 %v4293_v30  ;;  %3123 = vmatpush.bf16.msrb.mxu1 %v4303_v22 }
 0x307   : > { %3148 = vmatpush.bf16.msrb.mxu3 %v4320_v48 }
 0x309   : > { %3136 = vmatpush.bf16.msrb.mxu2 %v4311_v18 }
 0x30a   : > { %3113 = vmatpush.bf16.msrb.mxu0 %v4292_v20  ;;  %3124 = vmatpush.bf16.msrb.mxu1 %v4302_v29 }
 0x30b   : > { %3149 = vmatpush.bf16.msrb.mxu3 %v4319_v9 }
 0x30d   : > { %3137 = vmatpush.bf16.msrb.mxu2 %v4310_v23 }
 0x30e   : > { %3114 = vmatpush.bf16.msrb.mxu0 %v4291_v26  ;;  %3125 = vmatpush.bf16.msrb.mxu1 %v4301_v55 }
 0x30f   : > { %3150 = vmatpush.bf16.msrb.mxu3 %v4318_v12 }
 0x311   : > { %3138 = vmatpush.bf16.msrb.mxu2 %v4309_v51 }
 0x312   : > { %3126 = vmatpush.bf16.msrb.mxu1 %v4300_v3  ;;  %v2629_v3 = vperm.slane %v6176_v13, 3  ;;  %v2914_v13 = vld [vmem:[%s6268_s6] sm:$0x1] }
 0x313   : > { %3151 = vmatpush.bf16.msrb.mxu3 %v4317_v5 }
 0x315   : > { %3139 = vmatpush.bf16.msrb.mxu2 %v4308_v38 }
 0x316   : > { %3127 = vmatpush.bf16.msrb.mxu1 %v4299_v35 }
 0x317   : > { %3152 = vmatpush.bf16.msrb.mxu3 %v4316_v53 }
 0x319   : > { %3140 = vmatpush.bf16.msrb.mxu2 %v4307_v10 }
 0x31b   : > { %3153 = vmatpush.bf16.msrb.mxu3 %v4315_v11 }
 0x32d   : > { %v2643_v50 = vpop.f32.mrf.mxu0 }
 0x32e   : > { %v2656_v41 = vpop.f32.mrf.mxu1  ;;  %v2644_v54 = vadd.f32 %v2643_v50, %v2626_v52 }
 0x330   : > { %v2657_v21 = vadd.f32 %v2656_v41, %v2644_v54 }
 0x335   : > { %v2645_v63 = vpop.f32.mrf.mxu0 }
 0x336   : > { %v2658_v31 = vpop.f32.mrf.mxu1 }
 0x33d   : > { %v2695_v47 = vpop.f32.mrf.mxu0 }
 0x33e   : > { %v2708_v39 = vpop.f32.mrf.mxu1  ;;  %v2696_v0 = vadd.f32 %v2695_v47, %v2627_v43 }
 0x33f   : > { %v2669_v62 = vpop.f32.mrf.mxu2 }
 0x340   : > { %v2682_v49 = vpop.f32.mrf.mxu3  ;;  %v2670_v46 = vadd.f32 %v2669_v62, %v2657_v21  ;;  %v2709_v57 = vadd.f32 %v2708_v39, %v2696_v0 }
 0x342   : > { %v2683_v8 = vadd.f32 %v2682_v49, %v2670_v46 }
 0x344   : > { %v2842_v28 = vmax.f32 %v2683_v8, 0.0 }
 0x345   : > { %v2697_v17 = vpop.f32.mrf.mxu0 }
 0x346   : > { %v2846_v32 = vpack.c.bf16 %v2842_v28, %v2842_v28  ;;  %v2710_v59 = vpop.f32.mrf.mxu1 }
 0x347   : > { %v2671_v44 = vpop.f32.mrf.mxu2 }
 0x348   : > { %v2684_v56 = vpop.f32.mrf.mxu3  ;;  %3115 = vmatmul.bf16.vlgmr.msrb.gmra.mxu0 %v2846_v32 }
 0x34e   : > { %v2747_v2 = vpop.f32.mrf.mxu0 }
 0x34f   : > { %v2721_v33 = vpop.f32.mrf.mxu2  ;;  %v2748_v14 = vadd.f32 %v2747_v2, %v2628_v25 }
 0x350   : > { %v2734_v58 = vpop.f32.mrf.mxu3  ;;  %v2722_v27 = vadd.f32 %v2721_v33, %v2709_v57 }
 0x351   : > { %v2760_v1 = vpop.f32.mrf.mxu1 }
 0x352   : > { %v2735_v34 = vadd.f32 %v2734_v58, %v2722_v27  ;;  %v2761_v6 = vadd.f32 %v2760_v1, %v2748_v14 }
 0x354   : > { %v2843_v37 = vmax.f32 %v2735_v34, 0.0 }
 0x356   : > { %v2847_v16 = vpack.c.bf16 %v2843_v37, %v2843_v37  ;;  %v2749_v15 = vpop.f32.mrf.mxu0 }
 0x357   : > { %v2723_v61 = vpop.f32.mrf.mxu2 }
 0x358   : > { %v2736_v60 = vpop.f32.mrf.mxu3  ;;  %3128 = vmatmul.bf16.vlgmr.msrb.gmra.mxu1 %v2847_v16 }
 0x359   : > { %v2762_v7 = vpop.f32.mrf.mxu1 }
 0x35f   : > { %v2773_v4 = vpop.f32.mrf.mxu2 }
 0x360   : > { %v2786_v30 = vpop.f32.mrf.mxu3  ;;  %v2774_v20 = vadd.f32 %v2773_v4, %v2761_v6 }
 0x362   : > { %v2787_v45 = vadd.f32 %v2786_v30, %v2774_v20 }
 0x364   : > { %v2844_v26 = vmax.f32 %v2787_v45, 0.0 }
 0x366   : > { %v2848_v22 = vpack.c.bf16 %v2844_v26, %v2844_v26 }
 0x367   : > { %v2775_v29 = vpop.f32.mrf.mxu2 }
 0x368   : > { %v2788_v24 = vpop.f32.mrf.mxu3  ;;  %3141 = vmatmul.bf16.vlgmr.msrb.gmra.mxu2 %v2848_v22 }
 0x36e   : > { %v2799_v55 = vpop.f32.mrf.mxu0 }
 0x36f   : > { %v2800_v42 = vadd.f32 %v2799_v55, %v2629_v3 }
 0x370   : > { %v2812_v36 = vpop.f32.mrf.mxu1 }
 0x371   : > { %v2813_v52 = vadd.f32 %v2812_v36, %v2800_v42 }
 0x376   : > { %v2801_v50 = vpop.f32.mrf.mxu0 }
 0x378   : > { %v2814_v41 = vpop.f32.mrf.mxu1 }
 0x37f   : > { %v2825_v35 = vpop.f32.mrf.mxu2 }
 0x380   : > { %v2838_v18 = vpop.f32.mrf.mxu3  ;;  %v2826_v54 = vadd.f32 %v2825_v35, %v2813_v52 }
 0x382   : > { %v2839_v23 = vadd.f32 %v2838_v18, %v2826_v54 }
 0x384   : > { %v2845_v63 = vmax.f32 %v2839_v23, 0.0 }
 0x386   : > { %v2849_v31 = vpack.c.bf16 %v2845_v63, %v2845_v63 }
 0x387   : > { %v2827_v51 = vpop.f32.mrf.mxu2 }
 0x388   : > { %v2840_v21 = vpop.f32.mrf.mxu3  ;;  %3154 = vmatmul.bf16.vlgmr.msrb.gmra.mxu3 %v2849_v31 }
 0x3c5   : > { %v3116_v62 = vpop.f32.mrf.mxu0 }
 0x3c6   : > { %v3117_v39 = vadd.f32 %v3116_v62, %v2914_v13 }
 0x3cd   : > { %v3118_v49 = vpop.f32.mrf.mxu0 }
 0x3d5   : > { %v3129_v46 = vpop.f32.mrf.mxu1 }
 0x3d6   : > { %v3130_v28 = vadd.f32 %v3129_v46, %v3117_v39 }
 0x3dd   : > { %v3131_v38 = vpop.f32.mrf.mxu1 }
 0x3eb   : > { %v3142_v8 = vpop.f32.mrf.mxu2 }
 0x3ec   : > { %v3143_v10 = vadd.f32 %v3142_v8, %v3130_v28 }
 0x3f3   : > { %v3144_v47 = vpop.f32.mrf.mxu2 }
 0x40b   : > { %v3155_v40 = vpop.f32.mrf.mxu3 }
 0x40c   : > { %v3156_v32 = vadd.f32 %v3155_v40, %v3143_v10 }
 0x40e   : > { %v4128_v43 = vmul.f32 -1.442695, %v3156_v32 }
 0x410   : > { %4404 = vpow2.f32 %v4128_v43 }
 0x413   : > { %v3157_v44 = vpop.f32.mrf.mxu3 }
 0x416   : > { %v4405_v56 = vpop.eup %4404 }
 0x417   : > { %v3162_v19 = vadd.f32 1.0, %v4405_v56 }
 0x419   : > { %4406 = vrcp.f32 %v3162_v19  ;;  %v3174_v59 = vand.u32 2147483648, %v3162_v19  ;;  %v3172_v33 = vand.u32 2147483647, %v3162_v19  ;;  %vm3168_vm4 = vweird.f32 %v3162_v19 }
 0x41b   : > { %v3175_v27 = vor.u32 1.1754944e-38, %v3174_v59  ;;  %vm3173_vm6 = vcmp.eq.f32.partialorder %v3172_v33, 8.507059e+37 }
 0x41f   : > { %v4407_v0 = vpop.eup %4406 }
 0x420   : > { %v3164_v48 = vmul.f32 %v4407_v0, %v3162_v19  ;;  %vm3169_vm3 = vweird.f32 %v4407_v0 }
 0x421   : > { %vm3170_vm5 = vmor %vm3168_vm4, %vm3169_vm3 }
 0x422   : > { %v3165_v17 = vsub.f32 1.0, %v3164_v48 }
 0x424   : > { %v3166_v57 = vmul.f32 %v4407_v0, %v3165_v17 }
 0x426   : > { %v3167_v58 = vadd.f32 %v4407_v0, %v3166_v57 }
 0x428   : > { %v3171_v9 = vsel %vm3170_vm5, %v4407_v0, %v3167_v58 }
 0x429   : > { %v3176_v34 = vsel %vm3173_vm6, %v3175_v27, %v3171_v9 }
 0x42a   : > { %3178 = vst [vmem:[%s4711_s19] sm:$0x1] %v3176_v34 }
 0x42b   : > { %4435 = shalt.err (!%p4432_p4)
}
 0x42c   : > { %4339 = dma.vmem_to_hbm [thread:$0]  (%p4563_p5), %s3191_s17, 16, %s3193_s13, %s3180_s21  }
 0x42d PF: > { %p4345_p7 = scmp.ge.s32.totalorder %s4474_s27, 2  ;;  %s3204_s19 = sand.u32 1, %s4462_s24  }
 0x42e   : > { %s3205_s9 = scalar_lea.sflag [#allocation4], %s3204_s19 }
 0x42f   : > { %p4342_p8 = pnand %p4345_p7, %p4567_p6 }
 0x431   : > { %p4343_p9 = pneg %p4342_p8 }
 0x433   : > { %4457 = dma.done.wait (%p4343_p9), %s3205_s9, 16  }
 0x434   : > { %4459 = vsyncadd (%p4343_p9), %s3205_s9, 4294967280  ;;  %p17_p10 = scmp.ge.s32.totalorder %s4550_s30, 4   ;;  %s6278_s24 = smov %s4466_s25 }
 0x435   : > { %s6279_s25 = smov %s4470_s26  ;;  %s6280_s26 = smov %s4561_s10 }
 0x436   : > { %s6281_s27 = smov %s4550_s30  ;;  %19 = sbr.rel (!%p17_p10) target bundleno = 5 (0x5), region = 102 }
 0x43b   :  { %3210 = vsyncpa [#allocation4], 1 }
 0x43c   :  { %3212 = vsyncpa [#allocation4 + $0x1], 1 }

</bundles_post_ra>
